<compile_context>
chip_gen: v7x
topology: tpu7x:2x2x1
jax: 0.10.0
libtpu: 0.0.40
codegen_flags: <defaults>
</compile_context>

<pallas_src>
import functools

import numpy as np
import jax
import jax.numpy as jnp
from jax.experimental import pallas as pl
from jax.experimental.pallas import tpu as pltpu

EPS = 1e-5


def _block_kernel(cols_ref, w_ref, bias_ref, gamma_ref, beta_ref,
                  cg_ref, gc_ref, o_ref):
    """One batch element per grid step.

    cols_ref  : (1, H*W, 9*Cin)  im2col patches for this image
    w_ref     : (9*Cin, Cout)    channel-dense conv weights
    bias_ref  : (1, Cout)        conv bias
    gamma_ref : (1, Cout)        GroupNorm weight
    beta_ref  : (1, Cout)        GroupNorm bias
    cg_ref    : (Cout, groups)   channel->group reduce, 1/(H*W*cpg) folded in
    gc_ref    : (groups, Cout)   group->channel broadcast (0/1)
    o_ref     : (1, H*W, Cout)   NHWC-flat output (pixels, channels)
    """
    cols = cols_ref[0]                                        # (P, 9*Cin)

    # Convolution: a single channel-dense MXU matmul with M = H*W.
    acc = jnp.dot(cols, w_ref[...], preferred_element_type=jnp.float32)
    acc = acc + bias_ref[...]                                 # (P, Cout)

    # GroupNorm: two-pass biased variance. Per-channel pixel sums reduce over
    # the sublane axis; group reduce + broadcast are two tiny skinny matmuls.
    csum = jnp.sum(acc, axis=0, keepdims=True)                # (1, Cout)
    mean = jnp.dot(
        jnp.dot(csum, cg_ref[...], preferred_element_type=jnp.float32),
        gc_ref[...], preferred_element_type=jnp.float32)      # (1, Cout)
    cen = acc - mean
    vsum = jnp.sum(cen * cen, axis=0, keepdims=True)          # (1, Cout)
    var = jnp.dot(
        jnp.dot(vsum, cg_ref[...], preferred_element_type=jnp.float32),
        gc_ref[...], preferred_element_type=jnp.float32)      # (1, Cout)
    inv = jax.lax.rsqrt(jnp.maximum(var, 0.0) + EPS)
    y = cen * (inv * gamma_ref[...]) + beta_ref[...]          # (P, Cout)

    # Mish via a single exp: y * tanh(softplus(y)) == y * u/(u+2), u=t*(t+2).
    # Exact divide keeps the f32 test tolerance; pl.reciprocal(approx=True)
    # is the perf knob once looser numerics are acceptable.
    t = jnp.exp(y)
    u = t * (t + 2.0)
    mish = jnp.where(y > 20.0, y, y * (u / (u + 2.0)))
    o_ref[0] = mish.astype(o_ref.dtype)


@functools.partial(jax.jit, static_argnames=("groups",))
def block_forward(x_nchw, w_oihw, bias, gamma, beta, groups=8):
    """Equivalent of Block.forward.  Input/output NCHW (PyTorch convention)."""
    B, Cin, H, W = x_nchw.shape
    Cout = w_oihw.shape[0]
    assert w_oihw.shape[1:] == (Cin, 3, 3)
    assert Cout % groups == 0
    P = H * W
    K = 9 * Cin

    # NCHW -> NHWC, zero-pad, channel-dense im2col patches (B, H*W, 9*Cin).
    # Under jit these fuse into a single HBM producer for the kernel input.
    x_nhwc = jnp.transpose(x_nchw.astype(jnp.float32), (0, 2, 3, 1))
    x_pad = jnp.pad(x_nhwc, ((0, 0), (1, 1), (1, 1), (0, 0)))
    patches = [x_pad[:, ky:ky + H, kx:kx + W, :]
               for ky in range(3) for kx in range(3)]
    cols = jnp.concatenate(patches, axis=-1).reshape(B, P, K)

    # OIHW -> rows ordered as (ky, kx, ci), matching the patch lane order.
    w2d = jnp.transpose(w_oihw.astype(jnp.float32), (2, 3, 1, 0)).reshape(K, Cout)

    bias_r = bias.astype(jnp.float32).reshape(1, Cout)
    gamma_r = gamma.astype(jnp.float32).reshape(1, Cout)
    beta_r = beta.astype(jnp.float32).reshape(1, Cout)

    # Skinny group reduce / broadcast matrices (replace the dense WCxWC gsel).
    cpg = Cout // groups
    grp = np.arange(Cout) // cpg
    cg = jnp.asarray((grp[:, None] == np.arange(groups)[None, :])
                     .astype(np.float32) / float(P * cpg))     # (Cout, G)
    gc = jnp.asarray((np.arange(groups)[:, None] == grp[None, :])
                     .astype(np.float32))                      # (G, Cout)

    # TODO(synk): at realistic UNet sizes (C>=256, H=W=64) tile H*W into row
    # strips (grid=(B, n_strips)) with a two-phase GroupNorm (stats sweep with
    # running sum/sumsq scratch over an "arbitrary" strip axis, then a
    # normalize sweep), cast the conv-matmul operands to bf16, mark constant
    # operands pipeline_mode=pl.Buffered(1), and keep activations NHWC
    # end-to-end to drop the wrapper transposes.
    out = pl.pallas_call(
        _block_kernel,
        out_shape=jax.ShapeDtypeStruct((B, P, Cout), jnp.float32),
        grid_spec=pltpu.PrefetchScalarGridSpec(
            num_scalar_prefetch=0,
            grid=(B,),
            in_specs=[
                pl.BlockSpec((1, P, K), lambda b: (b, 0, 0)),
                pl.BlockSpec((K, Cout), lambda b: (0, 0)),
                pl.BlockSpec((1, Cout), lambda b: (0, 0)),
                pl.BlockSpec((1, Cout), lambda b: (0, 0)),
                pl.BlockSpec((1, Cout), lambda b: (0, 0)),
                pl.BlockSpec((Cout, groups), lambda b: (0, 0)),
                pl.BlockSpec((groups, Cout), lambda b: (0, 0)),
            ],
            out_specs=pl.BlockSpec((1, P, Cout), lambda b: (b, 0, 0)),
        ),
        compiler_params=pltpu.CompilerParams(
            dimension_semantics=("parallel",),
            vmem_limit_bytes=32 * 1024 * 1024),
    )(cols, w2d, bias_r, gamma_r, beta_r, cg, gc)

    # (B, H*W, Cout) is NHWC-flat. At realistic Cout (>=256) this store is
    # already lane-dense; at the toy Cout=8 the per-step output is only 8 KB
    # so the narrow store is negligible. One transpose back to NCHW.
    return jnp.transpose(out.reshape(B, H, W, Cout), (0, 3, 1, 2))


def _reference(x_nchw, w_oihw, bias, gamma, beta, groups=8):
    """Plain-JAX reference matching PyTorch semantics."""
    out = jax.lax.conv_general_dilated(
        x_nchw, w_oihw, window_strides=(1, 1), padding="SAME",
        dimension_numbers=("NCHW", "OIHW", "NCHW"))
    out = out + bias[None, :, None, None]
    B, C, H, W = out.shape
    g = out.reshape(B, groups, C // groups, H, W)
    mean = g.mean(axis=(2, 3, 4), keepdims=True)
    var = ((g - mean) ** 2).mean(axis=(2, 3, 4), keepdims=True)
    gn = (g - mean) / jnp.sqrt(var + EPS)
    gn = gn.reshape(B, C, H, W) * gamma[None, :, None, None] + beta[None, :, None, None]
    return gn * jnp.tanh(jax.nn.softplus(gn))


if __name__ == "__main__":
    # small shapes consistent with the module: dim=4, dim_out=8, groups=8
    B, Cin, H, W = 2, 4, 16, 16
    Cout, groups = 8, 8

    key = jax.random.PRNGKey(0)
    k_x, k_w, k_b, k_g, k_be = jax.random.split(key, 5)

    x = jax.random.normal(k_x, (B, Cin, H, W), dtype=jnp.float32)
    w = jax.random.normal(k_w, (Cout, Cin, 3, 3), dtype=jnp.float32) * 0.1
    bias = jax.random.normal(k_b, (Cout,), dtype=jnp.float32) * 0.1
    gamma = 1.0 + 0.1 * jax.random.normal(k_g, (Cout,), dtype=jnp.float32)
    beta = 0.1 * jax.random.normal(k_be, (Cout,), dtype=jnp.float32)

    out = block_forward(x, w, bias, gamma, beta, groups=groups)
    out = jax.block_until_ready(out)

    ref = _reference(x, w, bias, gamma, beta, groups=groups)
    assert out.shape == (B, Cout, H, W)
    err = float(jnp.max(jnp.abs(out - ref)))
    assert jnp.allclose(out, ref, atol=2e-4, rtol=2e-4), err

    print("KERNEL_OK")
</pallas_src>

<mosaic_0001>
module attributes {stable_mosaic.version = 11 : i64} {
  func.func @_block_kernel(%arg0: i32, %arg1: memref<1x256x36xf32, #tpu.memory_space<vmem>>, %arg2: memref<36x8xf32, #tpu.memory_space<vmem>>, %arg3: memref<1x8xf32, #tpu.memory_space<vmem>>, %arg4: memref<1x8xf32, #tpu.memory_space<vmem>>, %arg5: memref<1x8xf32, #tpu.memory_space<vmem>>, %arg6: memref<8x8xf32, #tpu.memory_space<vmem>>, %arg7: memref<8x8xf32, #tpu.memory_space<vmem>>, %arg8: memref<1x256x8xf32, #tpu.memory_space<vmem>>) attributes {dimension_semantics = [#tpu.dimension_semantics<parallel>], iteration_bounds = array<i64: 2>, scalar_prefetch = 0 : i64, scratch_operands = 0 : i64, tpu.core_type = #tpu.core_type<tc>, window_params = [{transform_indices = @transform_0, window_bounds = array<i64: 1, 256, 36>}, {pipeline_mode = #tpu.pipeline_mode<synchronous>, transform_indices = @transform_1, window_bounds = array<i64: 36, 8>}, {pipeline_mode = #tpu.pipeline_mode<synchronous>, transform_indices = @transform_2, window_bounds = array<i64: 1, 8>}, {pipeline_mode = #tpu.pipeline_mode<synchronous>, transform_indices = @transform_3, window_bounds = array<i64: 1, 8>}, {pipeline_mode = #tpu.pipeline_mode<synchronous>, transform_indices = @transform_4, window_bounds = array<i64: 1, 8>}, {pipeline_mode = #tpu.pipeline_mode<synchronous>, transform_indices = @transform_5, window_bounds = array<i64: 8, 8>}, {pipeline_mode = #tpu.pipeline_mode<synchronous>, transform_indices = @transform_6, window_bounds = array<i64: 8, 8>}, {transform_indices = @transform_7, window_bounds = array<i64: 1, 256, 8>}]} {
    %c0 = arith.constant 0 : index
    %c0_0 = arith.constant 0 : index
    %c0_1 = arith.constant 0 : index
    %0 = vector.load %arg1[%c0, %c0_0, %c0_1] : memref<1x256x36xf32, #tpu.memory_space<vmem>>, vector<1x256x36xf32>
    %1 = vector.shape_cast %0 : vector<1x256x36xf32> to vector<256x36xf32>
    %c0_2 = arith.constant 0 : index
    %c0_3 = arith.constant 0 : index
    %2 = vector.load %arg2[%c0_2, %c0_3] : memref<36x8xf32, #tpu.memory_space<vmem>>, vector<36x8xf32>
    %cst = arith.constant dense<0.000000e+00> : vector<256x8xf32>
    %3 = tpu.matmul %1, %2, %cst {dimension_numbers = #tpu.dot_dimension_numbers<[1], [0], [0], [1], [0, 0, 1, 1], [], []>} : vector<256x36xf32>, vector<36x8xf32>, vector<256x8xf32> -> vector<256x8xf32>
    %c0_4 = arith.constant 0 : index
    %c0_5 = arith.constant 0 : index
    %4 = vector.load %arg3[%c0_4, %c0_5] : memref<1x8xf32, #tpu.memory_space<vmem>>, vector<1x8xf32>
    %5 = vector.broadcast %4 : vector<1x8xf32> to vector<256x8xf32>
    %6 = arith.addf %3, %5 : vector<256x8xf32>
    %cst_6 = arith.constant dense<0.000000e+00> : vector<8xf32>
    %7 = vector.multi_reduction <add>, %6, %cst_6 [0] : vector<256x8xf32> to vector<8xf32>
    %8 = vector.shape_cast %7 : vector<8xf32> to vector<1x8xf32>
    %c0_7 = arith.constant 0 : index
    %c0_8 = arith.constant 0 : index
    %9 = vector.load %arg6[%c0_7, %c0_8] : memref<8x8xf32, #tpu.memory_space<vmem>>, vector<8x8xf32>
    %cst_9 = arith.constant dense<0.000000e+00> : vector<1x8xf32>
    %10 = tpu.matmul %8, %9, %cst_9 {dimension_numbers = #tpu.dot_dimension_numbers<[1], [0], [0], [1], [0, 0, 1, 1], [], []>} : vector<1x8xf32>, vector<8x8xf32>, vector<1x8xf32> -> vector<1x8xf32>
    %c0_10 = arith.constant 0 : index
    %c0_11 = arith.constant 0 : index
    %11 = vector.load %arg7[%c0_10, %c0_11] : memref<8x8xf32, #tpu.memory_space<vmem>>, vector<8x8xf32>
    %cst_12 = arith.constant dense<0.000000e+00> : vector<1x8xf32>
    %12 = tpu.matmul %10, %11, %cst_12 {dimension_numbers = #tpu.dot_dimension_numbers<[1], [0], [0], [1], [0, 0, 1, 1], [], []>} : vector<1x8xf32>, vector<8x8xf32>, vector<1x8xf32> -> vector<1x8xf32>
    %13 = vector.broadcast %12 : vector<1x8xf32> to vector<256x8xf32>
    %14 = arith.subf %6, %13 : vector<256x8xf32>
    %15 = arith.mulf %14, %14 : vector<256x8xf32>
    %cst_13 = arith.constant dense<0.000000e+00> : vector<8xf32>
    %16 = vector.multi_reduction <add>, %15, %cst_13 [0] : vector<256x8xf32> to vector<8xf32>
    %17 = vector.shape_cast %16 : vector<8xf32> to vector<1x8xf32>
    %c0_14 = arith.constant 0 : index
    %c0_15 = arith.constant 0 : index
    %18 = vector.load %arg6[%c0_14, %c0_15] : memref<8x8xf32, #tpu.memory_space<vmem>>, vector<8x8xf32>
    %cst_16 = arith.constant dense<0.000000e+00> : vector<1x8xf32>
    %19 = tpu.matmul %17, %18, %cst_16 {dimension_numbers = #tpu.dot_dimension_numbers<[1], [0], [0], [1], [0, 0, 1, 1], [], []>} : vector<1x8xf32>, vector<8x8xf32>, vector<1x8xf32> -> vector<1x8xf32>
    %c0_17 = arith.constant 0 : index
    %c0_18 = arith.constant 0 : index
    %20 = vector.load %arg7[%c0_17, %c0_18] : memref<8x8xf32, #tpu.memory_space<vmem>>, vector<8x8xf32>
    %cst_19 = arith.constant dense<0.000000e+00> : vector<1x8xf32>
    %21 = tpu.matmul %19, %20, %cst_19 {dimension_numbers = #tpu.dot_dimension_numbers<[1], [0], [0], [1], [0, 0, 1, 1], [], []>} : vector<1x8xf32>, vector<8x8xf32>, vector<1x8xf32> -> vector<1x8xf32>
    %cst_20 = arith.constant 0.000000e+00 : f32
    %22 = vector.broadcast %cst_20 : f32 to vector<1x8xf32>
    %23 = arith.maximumf %21, %22 : vector<1x8xf32>
    %cst_21 = arith.constant 9.99999974E-6 : f32
    %24 = vector.broadcast %cst_21 : f32 to vector<1x8xf32>
    %25 = arith.addf %23, %24 : vector<1x8xf32>
    %26 = math.rsqrt %25 : vector<1x8xf32>
    %c0_22 = arith.constant 0 : index
    %c0_23 = arith.constant 0 : index
    %27 = vector.load %arg4[%c0_22, %c0_23] : memref<1x8xf32, #tpu.memory_space<vmem>>, vector<1x8xf32>
    %28 = arith.mulf %26, %27 : vector<1x8xf32>
    %29 = vector.broadcast %28 : vector<1x8xf32> to vector<256x8xf32>
    %30 = arith.mulf %14, %29 : vector<256x8xf32>
    %c0_24 = arith.constant 0 : index
    %c0_25 = arith.constant 0 : index
    %31 = vector.load %arg5[%c0_24, %c0_25] : memref<1x8xf32, #tpu.memory_space<vmem>>, vector<1x8xf32>
    %32 = vector.broadcast %31 : vector<1x8xf32> to vector<256x8xf32>
    %33 = arith.addf %30, %32 : vector<256x8xf32>
    %34 = math.exp %33 : vector<256x8xf32>
    %cst_26 = arith.constant 2.000000e+00 : f32
    %35 = vector.broadcast %cst_26 : f32 to vector<256x8xf32>
    %36 = arith.addf %34, %35 : vector<256x8xf32>
    %37 = arith.mulf %34, %36 : vector<256x8xf32>
    %cst_27 = arith.constant 2.000000e+01 : f32
    %38 = vector.broadcast %cst_27 : f32 to vector<256x8xf32>
    %39 = arith.cmpf ogt, %33, %38 : vector<256x8xf32>
    %cst_28 = arith.constant 2.000000e+00 : f32
    %40 = vector.broadcast %cst_28 : f32 to vector<256x8xf32>
    %41 = arith.addf %37, %40 : vector<256x8xf32>
    %42 = arith.divf %37, %41 : vector<256x8xf32>
    %43 = arith.mulf %33, %42 : vector<256x8xf32>
    %44 = arith.select %39, %33, %43 : vector<256x8xi1>, vector<256x8xf32>
    %c0_29 = arith.constant 0 : index
    %c0_30 = arith.constant 0 : index
    %c0_31 = arith.constant 0 : index
    %45 = vector.load %arg8[%c0_29, %c0_30, %c0_31] : memref<1x256x8xf32, #tpu.memory_space<vmem>>, vector<1x256x8xf32>
    %46 = vector.shape_cast %45 : vector<1x256x8xf32> to vector<256x8xf32>
    %47 = vector.shape_cast %44 : vector<256x8xf32> to vector<1x256x8xf32>
    tpu.vector_store %arg8[%c0_29, %c0_30, %c0_31], %47 {strides = array<i32>} : memref<1x256x8xf32, #tpu.memory_space<vmem>>, vector<1x256x8xf32>,
    return
  }
  func.func @transform_0(%arg0: i32) -> (i32, i32, i32) {
    %c0_i32 = arith.constant 0 : i32
    %c0_i32_0 = arith.constant 0 : i32
    %c0_i32_1 = arith.constant 0 : i32
    return %arg0, %c0_i32, %c0_i32_0 : i32, i32, i32
  }
  func.func @transform_1(%arg0: i32) -> (i32, i32) {
    %c0_i32 = arith.constant 0 : i32
    %c0_i32_0 = arith.constant 0 : i32
    %c0_i32_1 = arith.constant 0 : i32
    return %c0_i32, %c0_i32_0 : i32, i32
  }
  func.func @transform_2(%arg0: i32) -> (i32, i32) {
    %c0_i32 = arith.constant 0 : i32
    %c0_i32_0 = arith.constant 0 : i32
    %c0_i32_1 = arith.constant 0 : i32
    return %c0_i32, %c0_i32_0 : i32, i32
  }
  func.func @transform_3(%arg0: i32) -> (i32, i32) {
    %c0_i32 = arith.constant 0 : i32
    %c0_i32_0 = arith.constant 0 : i32
    %c0_i32_1 = arith.constant 0 : i32
    return %c0_i32, %c0_i32_0 : i32, i32
  }
  func.func @transform_4(%arg0: i32) -> (i32, i32) {
    %c0_i32 = arith.constant 0 : i32
    %c0_i32_0 = arith.constant 0 : i32
    %c0_i32_1 = arith.constant 0 : i32
    return %c0_i32, %c0_i32_0 : i32, i32
  }
  func.func @transform_5(%arg0: i32) -> (i32, i32) {
    %c0_i32 = arith.constant 0 : i32
    %c0_i32_0 = arith.constant 0 : i32
    %c0_i32_1 = arith.constant 0 : i32
    return %c0_i32, %c0_i32_0 : i32, i32
  }
  func.func @transform_6(%arg0: i32) -> (i32, i32) {
    %c0_i32 = arith.constant 0 : i32
    %c0_i32_0 = arith.constant 0 : i32
    %c0_i32_1 = arith.constant 0 : i32
    return %c0_i32, %c0_i32_0 : i32, i32
  }
  func.func @transform_7(%arg0: i32) -> (i32, i32, i32) {
    %c0_i32 = arith.constant 0 : i32
    %c0_i32_0 = arith.constant 0 : i32
    %c0_i32_1 = arith.constant 0 : i32
    return %arg0, %c0_i32, %c0_i32_0 : i32, i32, i32
  }
}

</mosaic_0001>

<bundles_post_ra>
// kernel: block_forward.1
= control target key start
LH: loop header
LB: loop body
LE: loop exit
PB: predicated region body
PF: predicated region fallthrough
CT: control target
= control target key end

     0   :  { %s2016_s24 = smov 0   ;;  %s3207_s0 = inlined_call_operand.vmem [shape: f32[2,256,36], index: 0, kind: input, shape index: {}]   ;;  %s3208_s1 = inlined_call_operand.vmem [shape: f32[36,8], index: 1, kind: input, shape index: {}]   ;;  %s3209_s2 = inlined_call_operand.vmem [shape: f32[1,8], index: 2, kind: input, shape index: {}]   ;;  %s3210_s3 = inlined_call_operand.vmem [shape: f32[1,8], index: 3, kind: input, shape index: {}]   ;;  %s3211_s4 = inlined_call_operand.vmem [shape: f32[1,8], index: 4, kind: input, shape index: {}]   ;;  %s3212_s5 = inlined_call_operand.vmem [shape: f32[8,8], index: 5, kind: input, shape index: {}]   ;;  %s3213_s6 = inlined_call_operand.vmem [shape: f32[8,8], index: 6, kind: input, shape index: {}]   ;;  %s3214_s7 = inlined_call_operand.vmem [shape: f32[2,256,8], index: 7, kind: output, shape index: {}]  }
   0x1 LB: > { %s1637_s25 = sadd.s32 4294967295, %s1972_s24   ;;  %p1641_p0 = scmp.ge.s32.totalorder %s1972_s24, 1  ;;  %s1972_s24 = sphi %s2016_s24, %s17_s24  }
   0x2   : > { %p237_p1 = scmp.lt.s32.totalorder %s1972_s24, 3 }
   0x4   : > { %p238_p2 = pnand %p1641_p0, %p237_p1 }
   0x6   : > { %241 = sbr.rel (%p238_p2) target bundleno = 1365 (0x555), region = 48 }
   0xd   : > { %v311_v0 = vld [vmem:[%s3208_s1] sm:$0xff]  ;;  %v312_v1 = vld [vmem:[%s3208_s1 + $0x8] sm:$0xff]  ;;  %v313_v2 = vld [vmem:[%s3208_s1 + $0x10] sm:$0xff]  ;;  %p269_p3 = scmp.lt.s32.totalorder %s1637_s25, 1  ;;  %vm323_vm0 = vcmask 293888   ;;  %vm420_vm1 = vcmask 1043456  }
   0xe   : > { %v1812_v3 = vpack.c.bf16 %v312_v1, %v311_v0  ;;  %v314_v4 = vld [vmem:[%s3208_s1 + $0x18] sm:$0xff]  ;;  %v315_v6 = vld [vmem:[%s3208_s1 + $0x20] sm:$0xf]  ;;  %v1974_v40 = vmov 0.0   ;;  %vm1975_vm2 = vmmov 0   ;;  %vm649_vm3 = vcmask 64512  }
   0xf   : > { %v1816_v5 = vpack.c.bf16 %v314_v4, %v313_v2  ;;  %s3316_s25 = smov (!%p269_p3, %s1637_s25), 1  ;;  %v2116_v39 = vld [vmem:[%s3212_s5] sm:$0xff] }
  0x10   : > { %1813 = vmatprep.subr.bf16.mxu0 %v1812_v3  ;;  %1820 = vmatprep.subr.bf16.mxu1 %v1812_v3  ;;  %s1687_s11 = sshll.u32 %s3316_s25, 8  ;;  %v2126_v41 = vld [vmem:[%s3209_s2] ss:$0 sm:$0xff] }
  0x11   : > { %1815 = vmatpush3.bf16.msra.mxu0 %v1812_v3  ;;  %1823 = vmatpush3.bf16.msra.mxu1 %v1812_v3  ;;  %s2044_s14 = scalar_lea.vmem %s3207_s0, %s1687_s11  ;;  %s2963_s8 = scalar_lea.vmem %s3214_s7, %s1687_s11 }
  0x12   : > { %1817 = vmatprep.subr.bf16.mxu0 %v1816_v5  ;;  %1821 = vmatprep.subr.bf16.mxu1 %v1816_v5  ;;  %v279_v7 = vld [vmem:[%s2044_s14] sm:$0xff]  ;;  %v280_v8 = vld [vmem:[%s2044_s14 + $0x8] sm:$0xff]  ;;  %v281_v9 = vld [vmem:[%s2044_s14 + $0x10] sm:$0xff] }
  0x13   : > { %1744 = vmatprep.mubr.msk.f32.mxu0 %vm323_vm0, %v279_v7  ;;  %v299_v10 = vld [vmem:[%s2044_s14 + $0xa0] sm:$0xff]  ;;  %v300_v11 = vld [vmem:[%s2044_s14 + $0xa8] sm:$0xff]  ;;  %v301_v12 = vld [vmem:[%s2044_s14 + $0xb0] sm:$0xff] }
  0x14   : > { %1774 = vmatprep.mubr.msk.f32.mxu1 %vm323_vm0, %v299_v10  ;;  %v282_v13 = vld [vmem:[%s2044_s14 + $0x18] sm:$0xff]  ;;  %v283_v14 = vld [vmem:[%s2044_s14 + $0x20] sm:$0xff]  ;;  %v284_v17 = vld [vmem:[%s2044_s14 + $0x28] sm:$0xff] }
  0x15   : > { %1819 = vmatpush3.bf16.msra.mxu0 %v1816_v5  ;;  %1824 = vmatpush3.bf16.msra.mxu1 %v1816_v5  ;;  %v302_v15 = vld [vmem:[%s2044_s14 + $0xb8] sm:$0xff]  ;;  %v303_v16 = vld [vmem:[%s2044_s14 + $0xc0] sm:$0xff]  ;;  %v285_v18 = vld [vmem:[%s2044_s14 + $0x30] sm:$0xff] }
  0x16   : > { %1742 = vmatprep.subr.msk.mxu0 %vm420_vm1, %v315_v6  ;;  %1822 = vmatprep.subr.msk.mxu1 %vm420_vm1, %v315_v6  ;;  %v304_v19 = vld [vmem:[%s2044_s14 + $0xc8] sm:$0xff]  ;;  %v305_v20 = vld [vmem:[%s2044_s14 + $0xd0] sm:$0xff]  ;;  %v286_v21 = vld [vmem:[%s2044_s14 + $0x38] sm:$0xff] }
  0x17   : > { %v287_v22 = vld [vmem:[%s2044_s14 + $0x40] sm:$0xff]  ;;  %v306_v23 = vld [vmem:[%s2044_s14 + $0xd8] sm:$0xff]  ;;  %v288_v25 = vld [vmem:[%s2044_s14 + $0x48] sm:$0xff] }
  0x18   : > { %v307_v24 = vld [vmem:[%s2044_s14 + $0xe0] sm:$0xff]  ;;  %v289_v26 = vld [vmem:[%s2044_s14 + $0x50] sm:$0xff]  ;;  %v308_v27 = vld [vmem:[%s2044_s14 + $0xe8] sm:$0xff] }
  0x19   : > { %1743 = vmatpush3.msk.msra.mxu0 %vm420_vm1, %v315_v6  ;;  %1825 = vmatpush3.msk.msra.mxu1 %vm420_vm1, %v315_v6  ;;  %v309_v28 = vld [vmem:[%s2044_s14 + $0xf0] sm:$0xff]  ;;  %v290_v29 = vld [vmem:[%s2044_s14 + $0x58] sm:$0xff]  ;;  %v291_v30 = vld [vmem:[%s2044_s14 + $0x60] sm:$0xff] }
  0x1a   : > { %1745 = vmatmul.mubr.msk.f32.vlgmr.msra.gmra.mrb[0].mxu0 %vm323_vm0, %v280_v8  ;;  %1775 = vmatmul.mubr.msk.f32.vlgmr.msra.gmra.mrb[0].mxu1 %vm323_vm0, %v300_v11  ;;  %v310_v31 = vld [vmem:[%s2044_s14 + $0xf8] sm:$0xff]  ;;  %v292_v32 = vld [vmem:[%s2044_s14 + $0x68] sm:$0xff]  ;;  %v293_v33 = vld [vmem:[%s2044_s14 + $0x70] sm:$0xff] }
  0x1b   : > { %1747 = vmatprep.mubr.msk.f32.mxu0 %vm323_vm0, %v281_v9  ;;  %1777 = vmatprep.mubr.msk.f32.mxu1 %vm323_vm0, %v301_v12  ;;  %v294_v34 = vld [vmem:[%s2044_s14 + $0x78] sm:$0xff]  ;;  %v295_v35 = vld [vmem:[%s2044_s14 + $0x80] sm:$0xff]  ;;  %v296_v36 = vld [vmem:[%s2044_s14 + $0x88] sm:$0xff] }
  0x1c   : > { %v297_v37 = vld [vmem:[%s2044_s14 + $0x90] sm:$0xff]  ;;  %v298_v38 = vld [vmem:[%s2044_s14 + $0x98] sm:$0xff]  ;;  %1792 = vmatprep.subr.mxu1 %v1974_v40 }
  0x1d   : > { %1793 = vmatpush3.msra.mxu1 %v2116_v39 }
  0x1e   : > { %1748 = vmatmul.mubr.msk.f32.gmra.mrb[2].mxu0 %vm323_vm0, %v282_v13  ;;  %1778 = vmatmul.mubr.msk.f32.gmra.mrb[2].mxu1 %vm323_vm0, %v302_v15 }
  0x1f   : > { %1750 = vmatprep.mubr.msk.f32.mxu0 %vm323_vm0, %v283_v14  ;;  %1780 = vmatprep.mubr.msk.f32.mxu1 %vm323_vm0, %v303_v16 }
  0x20   : > { %1797 = vmatprep.subr.mxu1 %v1974_v40 }
  0x22   : > { %1751 = vmatmul.mubr.msk.f32.gmra.mrb[4].mxu0 %vm323_vm0, %v284_v17  ;;  %1781 = vmatmul.mubr.msk.f32.gmra.mrb[4].mxu1 %vm323_vm0, %v304_v19 }
  0x23   : > { %1753 = vmatprep.mubr.msk.f32.mxu0 %vm323_vm0, %v285_v18  ;;  %1783 = vmatprep.mubr.msk.f32.mxu1 %vm323_vm0, %v305_v20 }
  0x26   : > { %1754 = vmatmul.mubr.msk.f32.gmra.mrb[6].mxu0 %vm323_vm0, %v286_v21  ;;  %1784 = vmatmul.mubr.msk.f32.gmra.mrb[6].mxu1 %vm323_vm0, %v306_v23 }
  0x27   : > { %1756 = vmatprep.mubr.msk.f32.mxu0 %vm323_vm0, %v287_v22  ;;  %1786 = vmatprep.mubr.msk.f32.mxu1 %vm323_vm0, %v307_v24 }
  0x2a   : > { %1757 = vmatmul.mubr.msk.f32.gmra.mrb[8].mxu0 %vm323_vm0, %v288_v25  ;;  %1787 = vmatmul.mubr.msk.f32.gmra.mrb[8].mxu1 %vm323_vm0, %v308_v27 }
  0x2b   : > { %1759 = vmatprep.mubr.msk.f32.mxu0 %vm323_vm0, %v289_v26  ;;  %1789 = vmatprep.mubr.msk.f32.mxu1 %vm323_vm0, %v309_v28 }
  0x2e   : > { %1760 = vmatmul.mubr.msk.f32.gmra.mrb[10].mxu0 %vm323_vm0, %v290_v29  ;;  %1790 = vmatmul.mubr.msk.f32.gmra.mrb[10].mxu1 %vm323_vm0, %v310_v31 }
  0x2f   : > { %1762 = vmatprep.mubr.msk.f32.mxu0 %vm323_vm0, %v291_v30  ;;  %1794 = vmatprep.mubr.msk.f32.mxu1 %vm1975_vm2, %v1974_v40 }
  0x32   : > { %1763 = vmatmul.mubr.msk.f32.gmra.mrb[12].mxu0 %vm323_vm0, %v292_v32 }
  0x33   : > { %1765 = vmatprep.mubr.msk.f32.mxu0 %vm323_vm0, %v293_v33 }
  0x36   : > { %1766 = vmatmul.mubr.msk.f32.gmra.mrb[14].mxu0 %vm323_vm0, %v294_v34 }
  0x37   : > { %1768 = vmatprep.mubr.msk.f32.mxu0 %vm323_vm0, %v295_v35 }
  0x3a   : > { %1769 = vmatmul.mubr.msk.f32.gmra.mrb[16].mxu0 %vm323_vm0, %v296_v36 }
  0x3b   : > { %1771 = vmatprep.mubr.msk.f32.mxu0 %vm323_vm0, %v297_v37 }
  0x3e   : > { %1772 = vmatmul.mubr.msk.f32.gmra.mrb[18].mxu0 %vm323_vm0, %v298_v38 }
  0xed   : > { %v1746_v42 = vpop.f32.mrb[0].mxu0  ;;  %v2131_v45 = vpop.f32.mrb[0].mxu1 }
  0xee   : > { %v2129_v43 = vadd.f32 %v1746_v42, %v2126_v41  ;;  %v490_v44 = vpop.f32.mrb[1].mxu0  ;;  %v2136_v47 = vpop.f32.mrb[1].mxu1 }
  0xef   : > { %v2134_v46 = vadd.f32 %v2126_v41, %v490_v44 }
  0xf0   : > { %v651_v48 = vsel %vm649_vm3, %v2129_v43, 0.0 }
  0xf1   : > { %v650_v49 = vsel %vm649_vm3, %v2134_v46, 0.0  ;;  %v1749_v50 = vpop.f32.mrb[2].mxu0  ;;  %v2142_v52 = vpop.f32.mrb[2].mxu1 }
  0xf2   : > { %v500_v51 = vpop.f32.mrb[3].mxu0  ;;  %v2145_v53 = vadd.f32 %v1749_v50, %v2126_v41  ;;  %v2150_v55 = vpop.f32.mrb[3].mxu1  ;;  %v652_v56 = vadd.f32 %v651_v48, %v650_v49 }
  0xf3   : > { %v2148_v54 = vadd.f32 %v2126_v41, %v500_v51 }
  0xf4   : > { %v655_v62 = vsel %vm649_vm3, %v2145_v53, 0.0 }
  0xf5   : > { %v653_v57 = vsel %vm649_vm3, %v2148_v54, 0.0  ;;  %v1752_v58 = vpop.f32.mrb[4].mxu0  ;;  %v2154_v61 = vpop.f32.mrb[4].mxu1 }
  0xf6   : > { %v654_v59 = vadd.f32 %v653_v57, %v652_v56  ;;  %v510_v60 = vpop.f32.mrb[5].mxu0  ;;  %v2159_v63 = vadd.f32 %v1752_v58, %v2126_v41  ;;  %v2164_v1 = vpop.f32.mrb[5].mxu1 }
  0xf7   : > { %v2162_v0 = vadd.f32 %v2126_v41, %v510_v60 }
  0xf8   : > { %v656_v2 = vadd.f32 %v655_v62, %v654_v59  ;;  %v659_v8 = vsel %vm649_vm3, %v2159_v63, 0.0 }
  0xf9   : > { %v657_v3 = vsel %vm649_vm3, %v2162_v0, 0.0  ;;  %v1755_v4 = vpop.f32.mrb[6].mxu0  ;;  %v2168_v7 = vpop.f32.mrb[6].mxu1 }
  0xfa   : > { %v658_v5 = vadd.f32 %v657_v3, %v656_v2  ;;  %v520_v6 = vpop.f32.mrb[7].mxu0  ;;  %v2173_v9 = vadd.f32 %v1755_v4, %v2126_v41  ;;  %v2178_v11 = vpop.f32.mrb[7].mxu1 }
  0xfb   : > { %v2176_v10 = vadd.f32 %v2126_v41, %v520_v6 }
  0xfc   : > { %v660_v12 = vadd.f32 %v659_v8, %v658_v5  ;;  %v663_v18 = vsel %vm649_vm3, %v2173_v9, 0.0 }
  0xfd   : > { %v661_v13 = vsel %vm649_vm3, %v2176_v10, 0.0  ;;  %v1758_v14 = vpop.f32.mrb[8].mxu0  ;;  %v2182_v17 = vpop.f32.mrb[8].mxu1 }
  0xfe   : > { %v662_v15 = vadd.f32 %v661_v13, %v660_v12  ;;  %v530_v16 = vpop.f32.mrb[9].mxu0  ;;  %v2187_v19 = vadd.f32 %v1758_v14, %v2126_v41  ;;  %v2192_v21 = vpop.f32.mrb[9].mxu1 }
  0xff   : > { %v2190_v20 = vadd.f32 %v2126_v41, %v530_v16 }
 0x100   : > { %v664_v22 = vadd.f32 %v663_v18, %v662_v15  ;;  %v667_v28 = vsel %vm649_vm3, %v2187_v19, 0.0 }
 0x101   : > { %v665_v23 = vsel %vm649_vm3, %v2190_v20, 0.0  ;;  %v1761_v24 = vpop.f32.mrb[10].mxu0  ;;  %v2196_v27 = vpop.f32.mrb[10].mxu1 }
 0x102   : > { %v666_v25 = vadd.f32 %v665_v23, %v664_v22  ;;  %v540_v26 = vpop.f32.mrb[11].mxu0  ;;  %v2201_v29 = vadd.f32 %v1761_v24, %v2126_v41  ;;  %v2206_v31 = vpop.f32.mrb[11].mxu1  ;;  %v2250_v23 = vadd.f32 %v2126_v41, %v2136_v47 }
 0x103   : > { %v2204_v30 = vadd.f32 %v2126_v41, %v540_v26 }
 0x104   : > { %v668_v32 = vadd.f32 %v667_v28, %v666_v25  ;;  %v671_v37 = vsel %vm649_vm3, %v2201_v29, 0.0 }
 0x105   : > { %v669_v33 = vsel %vm649_vm3, %v2204_v30, 0.0  ;;  %v1764_v34 = vpop.f32.mrb[12].mxu0 }
 0x106   : > { %v670_v35 = vadd.f32 %v669_v33, %v668_v32  ;;  %v550_v36 = vpop.f32.mrb[13].mxu0  ;;  %v2213_v38 = vadd.f32 %v1764_v34, %v2126_v41  ;;  %v2258_v32 = vadd.f32 %v2131_v45, %v2126_v41  ;;  %v689_v33 = vsel %vm649_vm3, %v2250_v23, 0.0 }
 0x107   : > { %v2216_v42 = vadd.f32 %v2126_v41, %v550_v36  ;;  %v2264_v34 = vadd.f32 %v2126_v41, %v2150_v55 }
 0x108   : > { %v672_v44 = vadd.f32 %v671_v37, %v670_v35  ;;  %v675_v56 = vsel %vm649_vm3, %v2213_v38, 0.0  ;;  %v691_v36 = vsel %vm649_vm3, %v2258_v32, 0.0  ;;  %v2270_v37 = vadd.f32 %v2142_v52, %v2126_v41 }
 0x109   : > { %v673_v48 = vsel %vm649_vm3, %v2216_v42, 0.0  ;;  %v1767_v49 = vpop.f32.mrb[14].mxu0  ;;  %v693_v45 = vsel %vm649_vm3, %v2264_v34, 0.0 }
 0x10a   : > { %v674_v50 = vadd.f32 %v673_v48, %v672_v44  ;;  %v560_v51 = vpop.f32.mrb[15].mxu0  ;;  %v2223_v57 = vadd.f32 %v1767_v49, %v2126_v41  ;;  %v2276_v44 = vadd.f32 %v2126_v41, %v2164_v1  ;;  %v695_v55 = vsel %vm649_vm3, %v2270_v37, 0.0 }
 0x10b   : > { %v2226_v58 = vadd.f32 %v2126_v41, %v560_v51  ;;  %v2288_v51 = vadd.f32 %v2126_v41, %v2178_v11 }
 0x10c   : > { %v676_v59 = vadd.f32 %v675_v56, %v674_v50  ;;  %v679_v4 = vsel %vm649_vm3, %v2223_v57, 0.0  ;;  %v2282_v50 = vadd.f32 %v2154_v61, %v2126_v41  ;;  %v697_v52 = vsel %vm649_vm3, %v2276_v44, 0.0 }
 0x10d   : > { %v677_v60 = vsel %vm649_vm3, %v2226_v58, 0.0  ;;  %v1770_v62 = vpop.f32.mrb[16].mxu0  ;;  %v701_v61 = vsel %vm649_vm3, %v2288_v51, 0.0 }
 0x10e   : > { %v678_v2 = vadd.f32 %v677_v60, %v676_v59  ;;  %v570_v3 = vpop.f32.mrb[17].mxu0  ;;  %v2233_v5 = vadd.f32 %v1770_v62, %v2126_v41  ;;  %v699_v1 = vsel %vm649_vm3, %v2282_v50, 0.0  ;;  %v2294_v60 = vadd.f32 %v2168_v7, %v2126_v41 }
 0x10f   : > { %v2236_v6 = vadd.f32 %v2126_v41, %v570_v3  ;;  %v2300_v62 = vadd.f32 %v2126_v41, %v2192_v21 }
 0x110   : > { %v680_v8 = vadd.f32 %v679_v4, %v678_v2  ;;  %v683_v16 = vsel %vm649_vm3, %v2233_v5, 0.0  ;;  %v703_v11 = vsel %vm649_vm3, %v2294_v60, 0.0  ;;  %v2306_v4 = vadd.f32 %v2182_v17, %v2126_v41 }
 0x111   : > { %v681_v12 = vsel %vm649_vm3, %v2236_v6, 0.0  ;;  %v1773_v13 = vpop.f32.mrb[18].mxu0  ;;  %v705_v7 = vsel %vm649_vm3, %v2300_v62, 0.0 }
 0x112   : > { %v682_v14 = vadd.f32 %v681_v12, %v680_v8  ;;  %v580_v15 = vpop.f32.mrb[19].mxu0  ;;  %v2243_v18 = vadd.f32 %v1773_v13, %v2126_v41  ;;  %v2312_v8 = vadd.f32 %v2126_v41, %v2206_v31  ;;  %v707_v21 = vsel %vm649_vm3, %v2306_v4, 0.0 }
 0x113   : > { %v2246_v22 = vadd.f32 %v2126_v41, %v580_v15 }
 0x114   : > { %v684_v24 = vadd.f32 %v683_v16, %v682_v14  ;;  %v687_v28 = vsel %vm649_vm3, %v2243_v18, 0.0  ;;  %v2318_v14 = vadd.f32 %v2196_v27, %v2126_v41  ;;  %v709_v17 = vsel %vm649_vm3, %v2312_v8, 0.0  ;;  %v2327_v41 = vld [vmem:[%s3213_s6] sm:$0xff] }
 0x115   : > { %v685_v25 = vsel %vm649_vm3, %v2246_v22, 0.0 }
 0x116   : > { %v686_v26 = vadd.f32 %v685_v25, %v684_v24  ;;  %v711_v24 = vsel %vm649_vm3, %v2318_v14, 0.0 }
 0x118   : > { %v688_v47 = vadd.f32 %v687_v28, %v686_v26 }
 0x11a   : > { %v690_v35 = vadd.f32 %v689_v33, %v688_v47 }
 0x11c   : > { %v692_v48 = vadd.f32 %v691_v36, %v690_v35 }
 0x11e   : > { %v694_v49 = vadd.f32 %v693_v45, %v692_v48  ;;  %v867_v45 = vlaneseq }
 0x120   : > { %v696_v56 = vadd.f32 %v695_v55, %v694_v49  ;;  %v2339_v48 = vshrl.u32 %v867_v45, 7 }
 0x122   : > { %v698_v59 = vadd.f32 %v697_v52, %v696_v56  ;;  %v869_v52 = vsub.s32 0, %v2339_v48 }
 0x124   : > { %v700_v2 = vadd.f32 %v699_v1, %v698_v59 }
 0x126   : > { %v702_v3 = vadd.f32 %v701_v61, %v700_v2 }
 0x128   : > { %v704_v12 = vadd.f32 %v703_v11, %v702_v3 }
 0x12a   : > { %v706_v13 = vadd.f32 %v705_v7, %v704_v12 }
 0x12c   : > { %v708_v15 = vadd.f32 %v707_v21, %v706_v13 }
 0x12e   : > { %v710_v16 = vadd.f32 %v709_v17, %v708_v15 }
 0x130   : > { %v712_v25 = vadd.f32 %v711_v24, %v710_v16 }
 0x132   : > { %v713_v31 = vrot.slane %v712_v25, 4 }
 0x134   : > { %v714_v26 = vadd.f32 %v713_v31, %v712_v25 }
 0x136   : > { %v715_v28 = vrot.slane %v714_v26, 2 }
 0x138   : > { %v716_v33 = vadd.f32 %v715_v28, %v714_v26 }
 0x13a   : > { %v717_v47 = vrot.slane %v716_v33, 1 }
 0x13c   : > { %v718_v35 = vadd.f32 %v717_v47, %v716_v33 }
 0x13e   : > { %1795 = vmatmul.mubr.msk.f32.vlgmr.msra.gmra.mrb[12].mxu1 %vm649_vm3, %v718_v35 }
 0x13f   : > { %1798 = vmatpush3.msra.mxu1 %v2327_v41  ;;  %1799 = vmatprep.mubr.msk.f32.mxu1 %vm1975_vm2, %v1974_v40 }
 0x140   : > { %1802 = vmatprep.subr.mxu1 %v1974_v40 }
 0x211   : > { %v789_v27 = vpop.f32.mrb[12].mxu1 }
 0x212   : > { %v1796_v36 = vpop.f32.mrb[13].mxu1  ;;  %1800 = vmatmul.mubr.msk.f32.vlgmr.msra.gmra.mrb[14].mxu1 %vm649_vm3, %v789_v27 }
 0x213   : > { %1803 = vmatpush3.msra.mxu1 %v2116_v39  ;;  %1804 = vmatprep.mubr.msk.f32.mxu1 %vm1975_vm2, %v1974_v40 }
 0x214   : > { %1807 = vmatprep.subr.mxu1 %v1974_v40 }
 0x2e5   : > { %v863_v49 = vpop.f32.mrb[14].mxu1 }
 0x2e6   : > { %v1801_v55 = vpop.f32.mrb[15].mxu1  ;;  %v2344_v56 = vrot.slane %v863_v49, %v869_v52 }
 0x2e8   : > { %v2348_v59 = vsub.f32 %v2134_v46, %v2344_v56  ;;  %v2352_v39 = vsub.f32 %v2129_v43, %v2344_v56  ;;  %v2356_v1 = vsub.f32 %v2148_v54, %v2344_v56  ;;  %v2360_v61 = vsub.f32 %v2145_v53, %v2344_v56 }
 0x2e9   : > { %v2368_v46 = vsub.f32 %v2162_v0, %v2344_v56  ;;  %v2374_v54 = vsub.f32 %v2159_v63, %v2344_v56  ;;  %v2382_v13 = vsub.f32 %v2176_v10, %v2344_v56  ;;  %v2389_v63 = vsub.f32 %v2173_v9, %v2344_v56 }
 0x2ea   : > { %v903_v2 = vmul.f32 %v2348_v59, %v2348_v59  ;;  %v904_v3 = vmul.f32 %v2352_v39, %v2352_v39  ;;  %v905_v43 = vmul.f32 %v2356_v1, %v2356_v1  ;;  %v906_v53 = vmul.f32 %v2360_v61, %v2360_v61 }
 0x2eb   : > { %v907_v0 = vmul.f32 %v2368_v46, %v2368_v46  ;;  %v908_v15 = vmul.f32 %v2374_v54, %v2374_v54  ;;  %v2396_v10 = vsub.f32 %v2190_v20, %v2344_v56  ;;  %v909_v25 = vmul.f32 %v2382_v13, %v2382_v13 }
 0x2ec   : > { %v935_v11 = vsel %vm649_vm3, %v903_v2, 0.0  ;;  %v936_v7 = vsel %vm649_vm3, %v904_v3, 0.0  ;;  %v938_v21 = vsel %vm649_vm3, %v905_v43, 0.0  ;;  %v940_v16 = vsel %vm649_vm3, %v906_v53, 0.0 }
 0x2ed   : > { %v937_v12 = vadd.f32 %v936_v7, %v935_v11  ;;  %v942_v31 = vsel %vm649_vm3, %v907_v0, 0.0  ;;  %v2403_v9 = vsub.f32 %v2187_v19, %v2344_v56  ;;  %v910_v28 = vmul.f32 %v2389_v63, %v2389_v63 }
 0x2ee   : > { %v944_v33 = vsel %vm649_vm3, %v908_v15, 0.0  ;;  %v2410_v20 = vsub.f32 %v2204_v30, %v2344_v56  ;;  %v911_v35 = vmul.f32 %v2396_v10, %v2396_v10  ;;  %v946_v27 = vsel %vm649_vm3, %v909_v25, 0.0 }
 0x2ef   : > { %v939_v17 = vadd.f32 %v938_v21, %v937_v12  ;;  %v2417_v19 = vsub.f32 %v2201_v29, %v2344_v56  ;;  %v912_v45 = vmul.f32 %v2403_v9, %v2403_v9  ;;  %v948_v49 = vsel %vm649_vm3, %v910_v28, 0.0 }
 0x2f0   : > { %v2424_v30 = vsub.f32 %v2216_v42, %v2344_v56  ;;  %v913_v2 = vmul.f32 %v2410_v20, %v2410_v20  ;;  %v950_v3 = vsel %vm649_vm3, %v911_v35, 0.0  ;;  %v2431_v29 = vsub.f32 %v2213_v38, %v2344_v56 }
 0x2f1   : > { %v941_v24 = vadd.f32 %v940_v16, %v939_v17  ;;  %v914_v53 = vmul.f32 %v2417_v19, %v2417_v19  ;;  %v952_v11 = vsel %vm649_vm3, %v912_v45, 0.0  ;;  %v2438_v42 = vsub.f32 %v2226_v58, %v2344_v56 }
 0x2f2   : > { %v915_v12 = vmul.f32 %v2424_v30, %v2424_v30  ;;  %v954_v0 = vsel %vm649_vm3, %v913_v2, 0.0  ;;  %v2445_v38 = vsub.f32 %v2223_v57, %v2344_v56  ;;  %v916_v17 = vmul.f32 %v2431_v29, %v2431_v29 }
 0x2f3   : > { %v943_v26 = vadd.f32 %v942_v31, %v941_v24  ;;  %v956_v15 = vsel %vm649_vm3, %v914_v53, 0.0  ;;  %v2452_v58 = vsub.f32 %v2236_v6, %v2344_v56  ;;  %v917_v24 = vmul.f32 %v2438_v42, %v2438_v42 }
 0x2f4   : > { %v958_v25 = vsel %vm649_vm3, %v915_v12, 0.0  ;;  %v2459_v57 = vsub.f32 %v2233_v5, %v2344_v56  ;;  %v960_v28 = vsel %vm649_vm3, %v916_v17, 0.0  ;;  %v2466_v6 = vsub.f32 %v2246_v22, %v2344_v56 }
 0x2f5   : > { %v945_v47 = vadd.f32 %v944_v33, %v943_v26  ;;  %v918_v26 = vmul.f32 %v2445_v38, %v2445_v38  ;;  %v962_v35 = vsel %vm649_vm3, %v917_v24, 0.0  ;;  %v2473_v5 = vsub.f32 %v2243_v18, %v2344_v56 }
 0x2f6   : > { %v2480_v22 = vsub.f32 %v2250_v23, %v2344_v56  ;;  %v2487_v18 = vsub.f32 %v2258_v32, %v2344_v56  ;;  %v2494_v23 = vsub.f32 %v2264_v34, %v2344_v56  ;;  %v2501_v32 = vsub.f32 %v2270_v37, %v2344_v56 }
 0x2f7   : > { %v947_v36 = vadd.f32 %v946_v27, %v945_v47  ;;  %v919_v47 = vmul.f32 %v2452_v58, %v2452_v58  ;;  %v964_v45 = vsel %vm649_vm3, %v918_v26, 0.0  ;;  %v2508_v34 = vsub.f32 %v2276_v44, %v2344_v56 }
 0x2f8   : > { %v2515_v37 = vsub.f32 %v2282_v50, %v2344_v56  ;;  %v2522_v44 = vsub.f32 %v2288_v51, %v2344_v56  ;;  %v2529_v50 = vsub.f32 %v2294_v60, %v2344_v56  ;;  %v2536_v51 = vsub.f32 %v2300_v62, %v2344_v56 }
 0x2f9   : > { %v949_v55 = vadd.f32 %v948_v49, %v947_v36  ;;  %v920_v36 = vmul.f32 %v2459_v57, %v2459_v57  ;;  %v966_v2 = vsel %vm649_vm3, %v919_v47, 0.0  ;;  %v2543_v60 = vsub.f32 %v2306_v4, %v2344_v56 }
 0x2fa   : > { %v2550_v62 = vsub.f32 %v2312_v8, %v2344_v56  ;;  %v2557_v4 = vsub.f32 %v2318_v14, %v2344_v56 }
 0x2fb   : > { %v951_v43 = vadd.f32 %v950_v3, %v949_v55  ;;  %v921_v55 = vmul.f32 %v2466_v6, %v2466_v6  ;;  %v968_v53 = vsel %vm649_vm3, %v920_v36, 0.0 }
 0x2fc   : > { %v933_v8 = vmul.f32 %v2550_v62, %v2550_v62 }
 0x2fd   : > { %v953_v7 = vadd.f32 %v952_v11, %v951_v43  ;;  %v922_v43 = vmul.f32 %v2473_v5, %v2473_v5  ;;  %v970_v12 = vsel %vm649_vm3, %v921_v55, 0.0 }
 0x2fe   : > { %v994_v14 = vsel %vm649_vm3, %v933_v8, 0.0 }
 0x2ff   : > { %v955_v21 = vadd.f32 %v954_v0, %v953_v7  ;;  %v923_v7 = vmul.f32 %v2480_v22, %v2480_v22  ;;  %v972_v17 = vsel %vm649_vm3, %v922_v43, 0.0 }
 0x301   : > { %v957_v16 = vadd.f32 %v956_v15, %v955_v21  ;;  %v924_v21 = vmul.f32 %v2487_v18, %v2487_v18  ;;  %v974_v24 = vsel %vm649_vm3, %v923_v7, 0.0 }
 0x303   : > { %v959_v31 = vadd.f32 %v958_v25, %v957_v16  ;;  %v925_v16 = vmul.f32 %v2494_v23, %v2494_v23  ;;  %v976_v26 = vsel %vm649_vm3, %v924_v21, 0.0 }
 0x305   : > { %v961_v33 = vadd.f32 %v960_v28, %v959_v31  ;;  %v926_v31 = vmul.f32 %v2501_v32, %v2501_v32  ;;  %v978_v47 = vsel %vm649_vm3, %v925_v16, 0.0 }
 0x307   : > { %v963_v27 = vadd.f32 %v962_v35, %v961_v33  ;;  %v927_v33 = vmul.f32 %v2508_v34, %v2508_v34  ;;  %v980_v36 = vsel %vm649_vm3, %v926_v31, 0.0 }
 0x309   : > { %v965_v49 = vadd.f32 %v964_v45, %v963_v27  ;;  %v928_v27 = vmul.f32 %v2515_v37, %v2515_v37  ;;  %v982_v55 = vsel %vm649_vm3, %v927_v33, 0.0 }
 0x30b   : > { %v967_v3 = vadd.f32 %v966_v2, %v965_v49  ;;  %v929_v49 = vmul.f32 %v2522_v44, %v2522_v44  ;;  %v984_v43 = vsel %vm649_vm3, %v928_v27, 0.0 }
 0x30d   : > { %v969_v11 = vadd.f32 %v968_v53, %v967_v3  ;;  %v930_v3 = vmul.f32 %v2529_v50, %v2529_v50  ;;  %v986_v7 = vsel %vm649_vm3, %v929_v49, 0.0 }
 0x30f   : > { %v971_v0 = vadd.f32 %v970_v12, %v969_v11  ;;  %v931_v11 = vmul.f32 %v2536_v51, %v2536_v51  ;;  %v988_v21 = vsel %vm649_vm3, %v930_v3, 0.0 }
 0x311   : > { %v973_v15 = vadd.f32 %v972_v17, %v971_v0  ;;  %v932_v0 = vmul.f32 %v2543_v60, %v2543_v60 }
 0x313   : > { %v975_v25 = vadd.f32 %v974_v24, %v973_v15  ;;  %v990_v15 = vsel %vm649_vm3, %v931_v11, 0.0  ;;  %v934_v24 = vmul.f32 %v2557_v4, %v2557_v4 }
 0x315   : > { %v977_v28 = vadd.f32 %v976_v26, %v975_v25  ;;  %v992_v25 = vsel %vm649_vm3, %v932_v0, 0.0  ;;  %v996_v26 = vsel %vm649_vm3, %v934_v24, 0.0 }
 0x317   : > { %v979_v35 = vadd.f32 %v978_v47, %v977_v28 }
 0x319   : > { %v981_v45 = vadd.f32 %v980_v36, %v979_v35 }
 0x31b   : > { %v983_v2 = vadd.f32 %v982_v55, %v981_v45 }
 0x31d   : > { %v985_v53 = vadd.f32 %v984_v43, %v983_v2 }
 0x31f   : > { %v987_v12 = vadd.f32 %v986_v7, %v985_v53  ;;  %v1153_v7 = vld [vmem:[%s3210_s3] sm:$0x1] }
 0x321   : > { %v989_v17 = vadd.f32 %v988_v21, %v987_v12  ;;  %v2589_v21 = vld [vmem:[%s3211_s4] ss:$0 sm:$0xff] }
 0x323   : > { %v991_v16 = vadd.f32 %v990_v15, %v989_v17 }
 0x325   : > { %v993_v31 = vadd.f32 %v992_v25, %v991_v16 }
 0x327   : > { %v995_v56 = vadd.f32 %v994_v14, %v993_v31 }
 0x329   : > { %v997_v28 = vadd.f32 %v996_v26, %v995_v56 }
 0x32b   : > { %v998_v33 = vrot.slane %v997_v28, 4 }
 0x32d   : > { %v999_v47 = vadd.f32 %v998_v33, %v997_v28 }
 0x32f   : > { %v1000_v35 = vrot.slane %v999_v47, 2 }
 0x331   : > { %v1001_v27 = vadd.f32 %v1000_v35, %v999_v47 }
 0x333   : > { %v1002_v36 = vrot.slane %v1001_v27, 1 }
 0x335   : > { %v1003_v45 = vadd.f32 %v1002_v36, %v1001_v27 }
 0x337   : > { %1805 = vmatmul.mubr.msk.f32.vlgmr.msra.gmra.mrb[16].mxu1 %vm649_vm3, %v1003_v45 }
 0x338   : > { %1808 = vmatpush3.msra.mxu1 %v2327_v41  ;;  %1809 = vmatprep.mubr.msk.f32.mxu1 %vm1975_vm2, %v1974_v40 }
 0x40a   : > { %v1073_v49 = vpop.f32.mrb[16].mxu1 }
 0x40b   : > { %v1806_v55 = vpop.f32.mrb[17].mxu1  ;;  %1810 = vmatmul.mubr.msk.f32.vlgmr.msra.gmra.mrb[18].mxu1 %vm649_vm3, %v1073_v49 }
 0x4de   : > { %v1146_v2 = vpop.f32.mrb[18].mxu1 }
 0x4df   : > { %v1811_v3 = vpop.f32.mrb[19].mxu1  ;;  %v1150_v43 = vmax.f32 %v1146_v2, 0.0 }
 0x4e1   : > { %v1151_v53 = vadd.f32 1e-05, %v1150_v43 }
 0x4e3   : > { %1836 = vrsqrt.f32 %v1151_v53 }
 0x4ed   : > { %v1837_v11 = vpop.eup %1836 }
 0x4ee   : > { %v1154_v12 = vmul.f32 %v1837_v11, %v1153_v7 }
 0x4f0   : > { %v2580_v41 = vrot.slane %v1154_v12, %v869_v52 }
 0x4f2   : > { %v1159_v40 = vmul.f32 %v2580_v41, %v2348_v59  ;;  %v1160_v0 = vmul.f32 %v2580_v41, %v2352_v39  ;;  %v1161_v17 = vmul.f32 %v2580_v41, %v2356_v1  ;;  %v1162_v8 = vmul.f32 %v2580_v41, %v2360_v61 }
 0x4f3   : > { %v1163_v48 = vmul.f32 %v2580_v41, %v2368_v46  ;;  %v1164_v59 = vmul.f32 %v2580_v41, %v2374_v54  ;;  %v1165_v15 = vmul.f32 %v2580_v41, %v2382_v13  ;;  %v1166_v61 = vmul.f32 %v2580_v41, %v2389_v63 }
 0x4f4   : > { %v2598_v52 = vadd.f32 %v2589_v21, %v1159_v40  ;;  %v2603_v39 = vadd.f32 %v2589_v21, %v1160_v0  ;;  %v2608_v1 = vadd.f32 %v2589_v21, %v1161_v17  ;;  %v2613_v46 = vadd.f32 %v2589_v21, %v1162_v8 }
 0x4f5   : > { %v1167_v16 = vmul.f32 %v2580_v41, %v2396_v10  ;;  %v2618_v54 = vadd.f32 %v2589_v21, %v1163_v48  ;;  %v1168_v13 = vmul.f32 %v2580_v41, %v2403_v9  ;;  %v2624_v25 = vadd.f32 %v2589_v21, %v1164_v59 }
 0x4f6   : > { %v1230_v24 = vmul.f32 1.442695, %v2598_v52  ;;  %v1232_v31 = vmul.f32 1.442695, %v2603_v39  ;;  %v1169_v63 = vmul.f32 %v2580_v41, %v2410_v20  ;;  %v2630_v14 = vadd.f32 %v2589_v21, %v1165_v15 }
 0x4f7   : > { %v1234_v10 = vmul.f32 1.442695, %v2608_v1  ;;  %v1170_v56 = vmul.f32 %v2580_v41, %v2417_v19  ;;  %v2636_v26 = vadd.f32 %v2589_v21, %v1166_v61  ;;  %v1236_v9 = vmul.f32 1.442695, %v2613_v46 }
 0x4f8   : > { %v1171_v28 = vmul.f32 %v2580_v41, %v2424_v30  ;;  %v2642_v33 = vadd.f32 %v2589_v21, %v1167_v16  ;;  %1838 = vpow2.f32 %v1230_v24  ;;  %v1238_v20 = vmul.f32 1.442695, %v2618_v54 }
 0x4f9   : > { %v1172_v47 = vmul.f32 %v2580_v41, %v2431_v29  ;;  %v2648_v35 = vadd.f32 %v2589_v21, %v1168_v13  ;;  %1840 = vpow2.f32 %v1232_v31  ;;  %v1240_v19 = vmul.f32 1.442695, %v2624_v25 }
 0x4fa   : > { %v1173_v27 = vmul.f32 %v2580_v41, %v2438_v42  ;;  %v2654_v30 = vadd.f32 %v2589_v21, %v1169_v63  ;;  %1842 = vpow2.f32 %v1234_v10  ;;  %v1242_v36 = vmul.f32 1.442695, %v2630_v14 }
 0x4fb   : > { %v1174_v45 = vmul.f32 %v2580_v41, %v2445_v38  ;;  %v2660_v29 = vadd.f32 %v2589_v21, %v1170_v56  ;;  %1844 = vpow2.f32 %v1236_v9  ;;  %v1244_v49 = vmul.f32 1.442695, %v2636_v26 }
 0x4fc   : > { %v1175_v55 = vmul.f32 %v2580_v41, %v2452_v58  ;;  %v2666_v42 = vadd.f32 %v2589_v21, %v1171_v28  ;;  %1846 = vpow2.f32 %v1238_v20  ;;  %v1246_v2 = vmul.f32 1.442695, %v2642_v33 }
 0x4fd   : > { %v1176_v3 = vmul.f32 %v2580_v41, %v2459_v57  ;;  %v2672_v38 = vadd.f32 %v2589_v21, %v1172_v47  ;;  %1848 = vpow2.f32 %v1240_v19  ;;  %v1248_v43 = vmul.f32 1.442695, %v2648_v35 }
 0x4fe   : > { %v1177_v53 = vmul.f32 %v2580_v41, %v2466_v6  ;;  %v2678_v58 = vadd.f32 %v2589_v21, %v1173_v27  ;;  %1850 = vpow2.f32 %v1242_v36  ;;  %v1250_v11 = vmul.f32 1.442695, %v2654_v30 }
 0x4ff   : > { %3261 = vst [vmem:[#allocation2_spill] sm:$0xff] %v2672_v38  ;;  %v1178_v7 = vmul.f32 %v2580_v41, %v2473_v5  ;;  %v2684_v57 = vadd.f32 %v2589_v21, %v1174_v45  ;;  %1852 = vpow2.f32 %v1244_v49  ;;  %v1252_v12 = vmul.f32 1.442695, %v2660_v29 }
 0x500   : > { %3262 = vst [vmem:[#allocation3_spill] sm:$0xff] %v2678_v58  ;;  %v1179_v40 = vmul.f32 %v2580_v41, %v2480_v22  ;;  %v2690_v6 = vadd.f32 %v2589_v21, %v1175_v55  ;;  %1854 = vpow2.f32 %v1246_v2  ;;  %v1254_v0 = vmul.f32 1.442695, %v2666_v42 }
 0x501   : > { %3263 = vst [vmem:[#allocation4_spill] sm:$0xff] %v2684_v57  ;;  %v1180_v17 = vmul.f32 %v2580_v41, %v2487_v18  ;;  %v2696_v5 = vadd.f32 %v2589_v21, %v1176_v3  ;;  %1856 = vpow2.f32 %v1248_v43  ;;  %v1256_v8 = vmul.f32 1.442695, %v2672_v38 }
 0x502   : > { %3264 = vst [vmem:[#allocation5_spill] sm:$0xff] %v2690_v6  ;;  %v2699_v48 = vpop.eup %1838  ;;  %v1181_v22 = vmul.f32 %v2580_v41, %v2494_v23  ;;  %v2704_v59 = vadd.f32 %v2589_v21, %v1177_v53  ;;  %1858 = vpow2.f32 %v1250_v11  ;;  %v1258_v15 = vmul.f32 1.442695, %v2678_v58 }
 0x503   : > { %3265 = vst [vmem:[#allocation6_spill] sm:$0xff] %v2696_v5  ;;  %v2707_v61 = vpop.eup %1840  ;;  %v1182_v18 = vmul.f32 %v2580_v41, %v2501_v32  ;;  %v2712_v16 = vadd.f32 %v2589_v21, %v1178_v7  ;;  %1860 = vpow2.f32 %v1252_v12  ;;  %v1260_v24 = vmul.f32 1.442695, %v2684_v57 }
 0x504   : > { %3266 = vst [vmem:[#allocation7_spill] sm:$0xff] %v2704_v59  ;;  %v2715_v13 = vpop.eup %1842  ;;  %v1183_v23 = vmul.f32 %v2580_v41, %v2508_v34  ;;  %v2720_v31 = vadd.f32 %v2589_v21, %v1179_v40  ;;  %1862 = vpow2.f32 %v1254_v0  ;;  %v1262_v63 = vmul.f32 1.442695, %v2690_v6 }
 0x505   : > { %3267 = vst [vmem:[#allocation8_spill] sm:$0xff] %v2712_v16  ;;  %v2723_v10 = vpop.eup %1844  ;;  %v1184_v32 = vmul.f32 %v2580_v41, %v2515_v37  ;;  %v2728_v56 = vadd.f32 %v2589_v21, %v1180_v17  ;;  %1864 = vpow2.f32 %v1256_v8  ;;  %v1264_v9 = vmul.f32 1.442695, %v2696_v5 }
 0x506   : > { %3268 = vst [vmem:[#allocation9_spill] sm:$0xff] %v2720_v31  ;;  %v2731_v28 = vpop.eup %1846  ;;  %v1185_v34 = vmul.f32 %v2580_v41, %v2522_v44  ;;  %v2736_v20 = vadd.f32 %v2589_v21, %v1181_v22  ;;  %1866 = vpow2.f32 %v1258_v15  ;;  %v1266_v47 = vmul.f32 1.442695, %v2704_v59 }
 0x507   : > { %3269 = vst [vmem:[#allocation10_spill] sm:$0xff] %v2728_v56  ;;  %v2739_v19 = vpop.eup %1848  ;;  %v1186_v37 = vmul.f32 %v2580_v41, %v2529_v50  ;;  %v2744_v27 = vadd.f32 %v2589_v21, %v1182_v18  ;;  %1868 = vpow2.f32 %v1260_v24  ;;  %v1268_v36 = vmul.f32 1.442695, %v2712_v16 }
 0x508   : > { %3270 = vst [vmem:[#allocation11_spill] sm:$0xff] %v2736_v20  ;;  %v2747_v45 = vpop.eup %1850  ;;  %v1187_v44 = vmul.f32 %v2580_v41, %v2536_v51  ;;  %v2752_v49 = vadd.f32 %v2589_v21, %v1183_v23  ;;  %1870 = vpow2.f32 %v1262_v63  ;;  %v1270_v55 = vmul.f32 1.442695, %v2720_v31 }
 0x509   : > { %3271 = vst [vmem:[#allocation12_spill] sm:$0xff] %v2744_v27  ;;  %v2755_v2 = vpop.eup %1852  ;;  %v1188_v50 = vmul.f32 %v2580_v41, %v2543_v60  ;;  %v1189_v3 = vmul.f32 %v2580_v41, %v2550_v62  ;;  %1872 = vpow2.f32 %v1264_v9  ;;  %v1272_v43 = vmul.f32 1.442695, %v2728_v56 }
 0x50a   : > { %3272 = vst [vmem:[#allocation13_spill] sm:$0xff] %v2752_v49  ;;  %v1855_v53 = vpop.eup %1854  ;;  %v1190_v51 = vmul.f32 %v2580_v41, %v2557_v4  ;;  %v2765_v11 = vadd.f32 %v2589_v21, %v1184_v32  ;;  %1874 = vpow2.f32 %v1266_v47  ;;  %v1274_v7 = vmul.f32 1.442695, %v2736_v20 }
 0x50b   : > { %v2768_v12 = vpop.eup %1856  ;;  %v2771_v60 = vadd.f32 %v2589_v21, %v1185_v34  ;;  %1876 = vpow2.f32 %v1268_v36  ;;  %v1276_v62 = vmul.f32 1.442695, %v2744_v27  ;;  %v1278_v0 = vmul.f32 1.442695, %v2752_v49 }
 0x50c   : > { %3273 = vst [vmem:[#allocation14_spill] sm:$0xff] %v2765_v11  ;;  %v2774_v40 = vpop.eup %1858  ;;  %1878 = vpow2.f32 %v1270_v55  ;;  %v2780_v41 = vadd.f32 %v2589_v21, %v1186_v37  ;;  %v2783_v17 = vadd.f32 %v2589_v21, %v1187_v44  ;;  %v2786_v8 = vadd.f32 %v2589_v21, %v1188_v50 }
 0x50d   : > { %3274 = vst [vmem:[#allocation15_spill] sm:$0xff] %v2771_v60  ;;  %v2777_v4 = vpop.eup %1860  ;;  %1880 = vpow2.f32 %v1272_v43  ;;  %v2791_v15 = vadd.f32 %v2589_v21, %v1189_v3  ;;  %v2794_v18 = vadd.f32 %v2589_v21, %v1190_v51  ;;  %v1280_v24 = vmul.f32 1.442695, %v2765_v11 }
 0x50e   : > { %3275 = vst [vmem:[#allocation16_spill] sm:$0xff] %v2780_v41  ;;  %3276 = vst [vmem:[#allocation17_spill] sm:$0xff] %v2783_v17  ;;  %v2788_v22 = vpop.eup %1862  ;;  %1882 = vpow2.f32 %v1274_v7  ;;  %v1282_v63 = vmul.f32 1.442695, %v2771_v60  ;;  %v1294_v32 = vadd.f32 2.0, %v2699_v48  ;;  %v1295_v9 = vadd.f32 2.0, %v2707_v61 }
 0x50f   : > { %3277 = vst [vmem:[#allocation18_spill] sm:$0xff] %v2786_v8  ;;  %3278 = vst [vmem:[#allocation19_spill] sm:$0xff] %v2791_v15  ;;  %v2797_v23 = vpop.eup %1864  ;;  %1884 = vpow2.f32 %v1276_v62  ;;  %v1296_v47 = vadd.f32 2.0, %v2715_v13  ;;  %v1297_v37 = vadd.f32 2.0, %v2723_v10  ;;  %v1298_v21 = vadd.f32 2.0, %v2731_v28 }
 0x510   : > { %3279 = vst [vmem:[#allocation20_spill] sm:$0xff] %v2794_v18  ;;  %v1867_v34 = vpop.eup %1866  ;;  %1886 = vpow2.f32 %v1278_v0  ;;  %v1284_v44 = vmul.f32 1.442695, %v2780_v41  ;;  %v1286_v55 = vmul.f32 1.442695, %v2783_v17  ;;  %v1299_v50 = vadd.f32 2.0, %v2739_v19 }
 0x511   : > { %v1869_v36 = vpop.eup %1868  ;;  %v1300_v3 = vadd.f32 2.0, %v2747_v45  ;;  %1888 = vpow2.f32 %v1280_v24  ;;  %v1288_v51 = vmul.f32 1.442695, %v2786_v8  ;;  %v1301_v7 = vadd.f32 2.0, %v2755_v2 }
 0x512   : > { %v1871_v43 = vpop.eup %1870  ;;  %v1302_v62 = vadd.f32 2.0, %v1855_v53  ;;  %1890 = vpow2.f32 %v1282_v63  ;;  %v1290_v60 = vmul.f32 1.442695, %v2791_v15  ;;  %v1292_v11 = vmul.f32 1.442695, %v2794_v18 }
 0x513   : > { %v1873_v0 = vpop.eup %1872  ;;  %v2814_v41 = vmul.f32 %v2699_v48, %v1294_v32  ;;  %v2817_v49 = vmul.f32 %v2707_v61, %v1295_v9  ;;  %v2820_v24 = vmul.f32 %v2715_v13, %v1296_v47  ;;  %v2823_v8 = vmul.f32 %v2723_v10, %v1297_v37 }
 0x514   : > { %v1875_v17 = vpop.eup %1874  ;;  %v2826_v27 = vmul.f32 %v2731_v28, %v1298_v21  ;;  %1892 = vpow2.f32 %v1284_v44  ;;  %v1303_v18 = vadd.f32 2.0, %v2768_v12  ;;  %v2830_v48 = vmul.f32 %v2739_v19, %v1299_v50 }
 0x515   : > { %v1877_v63 = vpop.eup %1876  ;;  %v2833_v32 = vmul.f32 %v2747_v45, %v1300_v3  ;;  %1894 = vpow2.f32 %v1286_v55  ;;  %v1304_v13 = vadd.f32 2.0, %v2774_v40  ;;  %v2837_v10 = vmul.f32 %v2755_v2, %v1301_v7 }
 0x516   : > { %v1879_v61 = vpop.eup %1878  ;;  %v2839_v9 = vmul.f32 %v1855_v53, %v1302_v62  ;;  %1896 = vpow2.f32 %v1288_v51  ;;  %v1305_v47 = vadd.f32 2.0, %v2777_v4  ;;  %v1306_v37 = vadd.f32 2.0, %v2788_v22 }
 0x517   : > { %3280 = vst [vmem:[#allocation21_spill] sm:$0xff] %v2837_v10  ;;  %v1881_v28 = vpop.eup %1880  ;;  %v1307_v19 = vadd.f32 2.0, %v2797_v23  ;;  %1898 = vpow2.f32 %v1290_v60  ;;  %v1308_v45 = vadd.f32 2.0, %v1867_v34  ;;  %v1309_v44 = vadd.f32 2.0, %v1869_v36 }
 0x518   : > { %3281 = vst [vmem:[#allocation22_spill] sm:$0xff] %v2839_v9  ;;  %v1883_v21 = vpop.eup %1882  ;;  %v1310_v55 = vadd.f32 2.0, %v1871_v43  ;;  %1900 = vpow2.f32 %v1292_v11  ;;  %v1311_v3 = vadd.f32 2.0, %v1873_v0  ;;  %v1312_v2 = vadd.f32 2.0, %v1875_v17 }
 0x519   : > { %v1885_v50 = vpop.eup %1884  ;;  %v2845_v53 = vmul.f32 %v2768_v12, %v1303_v18  ;;  %v1313_v51 = vadd.f32 2.0, %v1877_v63  ;;  %v1314_v62 = vadd.f32 2.0, %v1879_v61  ;;  %v1315_v15 = vadd.f32 2.0, %v1881_v28 }
 0x51a   : > { %v1887_v7 = vpop.eup %1886  ;;  %v2848_v20 = vmul.f32 %v2774_v40, %v1304_v13  ;;  %v1316_v56 = vadd.f32 2.0, %v1883_v21  ;;  %v2851_v60 = vmul.f32 %v2777_v4, %v1305_v47  ;;  %v2854_v31 = vmul.f32 %v2788_v22, %v1306_v37 }
 0x51b   : > { %3282 = vst [vmem:[#allocation23_spill] sm:$0xff] %v2845_v53  ;;  %v2857_v11 = vmul.f32 %v2797_v23, %v1307_v19  ;;  %v1889_v16 = vpop.eup %1888  ;;  %v1317_v12 = vadd.f32 2.0, %v1885_v50  ;;  %v2859_v18 = vmul.f32 %v1867_v34, %v1308_v45  ;;  %v2861_v59 = vmul.f32 %v1869_v36, %v1309_v44 }
 0x51c   : > { %v2863_v5 = vmul.f32 %v1871_v43, %v1310_v55  ;;  %v1891_v40 = vpop.eup %1890  ;;  %v1318_v13 = vadd.f32 2.0, %v1887_v7  ;;  %v2865_v6 = vmul.f32 %v1873_v0, %v1311_v3  ;;  %v2867_v4 = vmul.f32 %v1875_v17, %v1312_v2 }
 0x51d   : > { %v1390_v22 = vadd.f32 2.0, %v2814_v41  ;;  %v2870_v47 = vmul.f32 %v1877_v63, %v1313_v51  ;;  %v2872_v23 = vmul.f32 %v1879_v61, %v1314_v62  ;;  %v2874_v37 = vmul.f32 %v1881_v28, %v1315_v15 }
 0x51e   : > { %v1391_v34 = vadd.f32 2.0, %v2817_v49  ;;  %v1893_v36 = vpop.eup %1892  ;;  %v1319_v19 = vadd.f32 2.0, %v1889_v16  ;;  %v2877_v43 = vmul.f32 %v1883_v21, %v1316_v56  ;;  %v1392_v45 = vadd.f32 2.0, %v2820_v24 }
 0x51f   : > { %v1393_v0 = vadd.f32 2.0, %v2823_v8  ;;  %v1895_v17 = vpop.eup %1894  ;;  %v1320_v44 = vadd.f32 2.0, %v1891_v40  ;;  %v2881_v55 = vmul.f32 %v1885_v50, %v1317_v12  ;;  %v1394_v63 = vadd.f32 2.0, %v2826_v27 }
 0x520   : > { %v1395_v61 = vadd.f32 2.0, %v2830_v48  ;;  %v1897_v15 = vpop.eup %1896  ;;  %v2885_v28 = vmul.f32 %v1887_v7, %v1318_v13  ;;  %v1396_v3 = vadd.f32 2.0, %v2833_v32  ;;  %v1397_v56 = vadd.f32 2.0, %v2837_v10 }
 0x521   : > { %1902 = vrcp.f32 %v1390_v22  ;;  %v1899_v21 = vpop.eup %1898  ;;  %v1321_v2 = vadd.f32 2.0, %v1893_v36  ;;  %v1398_v51 = vadd.f32 2.0, %v2839_v9  ;;  %v1399_v62 = vadd.f32 2.0, %v2845_v53 }
 0x522   : > { %3283 = vst [vmem:[#allocation24_spill] sm:$0xff] %v2885_v28  ;;  %1904 = vrcp.f32 %v1391_v34  ;;  %v1901_v50 = vpop.eup %1900  ;;  %v1322_v12 = vadd.f32 2.0, %v1895_v17  ;;  %v2891_v57 = vmul.f32 %v1889_v16, %v1319_v19  ;;  %v1400_v58 = vadd.f32 2.0, %v2848_v20 }
 0x523   : > { %1906 = vrcp.f32 %v1392_v45  ;;  %v1323_v7 = vadd.f32 2.0, %v1897_v15  ;;  %v2894_v13 = vmul.f32 %v1891_v40, %v1320_v44  ;;  %v1401_v38 = vadd.f32 2.0, %v2851_v60 }
 0x524   : > { %3284 = vst [vmem:[#allocation25_spill] sm:$0xff] %v2891_v57  ;;  %1908 = vrcp.f32 %v1393_v0  ;;  %v1324_v22 = vadd.f32 2.0, %v1899_v21  ;;  %v1402_v10 = vadd.f32 2.0, %v2854_v31  ;;  %v1403_v9 = vadd.f32 2.0, %v2857_v11 }
 0x525   : > { %3285 = vst [vmem:[#allocation26_spill] sm:$0xff] %v2894_v13  ;;  %1910 = vrcp.f32 %v1394_v63  ;;  %v1325_v34 = vadd.f32 2.0, %v1901_v50  ;;  %v2899_v53 = vmul.f32 %v1893_v36, %v1321_v2  ;;  %v1404_v16 = vadd.f32 2.0, %v2859_v18 }
 0x526   : > { %1912 = vrcp.f32 %v1395_v61  ;;  %v2902_v19 = vmul.f32 %v1895_v17, %v1322_v12  ;;  %vm1358_vm4 = vcmp.gt.f32.partialorder %v2598_v52, 20.0  ;;  %v1405_v40 = vadd.f32 2.0, %v2861_v59 }
 0x527   : > { %v1406_v45 = vadd.f32 2.0, %v2863_v5  ;;  %1914 = vrcp.f32 %v1396_v3  ;;  %v2907_v0 = vmul.f32 %v1897_v15, %v1323_v7  ;;  %vm1359_vm5 = vcmp.gt.f32.partialorder %v2603_v39, 20.0 }
 0x528   : > { %3286 = vst [vmem:[#allocation27_spill] sm:$0xff] %v2902_v19  ;;  %v1407_v44 = vadd.f32 2.0, %v2865_v6  ;;  %v2912_v36 = vadd.f32 2.0, %v2867_v4  ;;  %1916 = vrcp.f32 %v1397_v56  ;;  %v2914_v63 = vmul.f32 %v1899_v21, %v1324_v22 }
 0x529   : > { %3287 = vst [vmem:[#allocation28_spill] sm:$0xff] %v2907_v0  ;;  %vm1360_vm6 = vcmp.gt.f32.partialorder %v2608_v1, 20.0  ;;  %v2918_v17 = vadd.f32 2.0, %v2870_v47  ;;  %v2921_v61 = vadd.f32 2.0, %v2872_v23  ;;  %1918 = vrcp.f32 %v1398_v51 }
 0x52a   : > { %v2923_v15 = vmul.f32 %v1901_v50, %v1325_v34  ;;  %vm1361_vm7 = vcmp.gt.f32.partialorder %v2613_v46, 20.0  ;;  %v2927_v3 = vadd.f32 2.0, %v2874_v37  ;;  %v2930_v56 = vadd.f32 2.0, %v2877_v43 }
 0x52b   : > { %1920 = vrcp.f32 %v1399_v62  ;;  %v1903_v21 = vpop.eup %1902  ;;  %vm1362_vm8 = vcmp.gt.f32.partialorder %v2618_v54, 20.0  ;;  %v2934_v2 = vadd.f32 2.0, %v2881_v55  ;;  %v2937_v12 = vadd.f32 2.0, %v2885_v28 }
 0x52c   : > { %v2940_v51 = vadd.f32 2.0, %v2891_v57  ;;  %1922 = vrcp.f32 %v1400_v58  ;;  %v1905_v50 = vpop.eup %1904  ;;  %vm1363_vm9 = vcmp.gt.f32.partialorder %v2624_v25, 20.0  ;;  %v2944_v7 = vadd.f32 2.0, %v2894_v13 }
 0x52d   : > { %v2947_v62 = vadd.f32 2.0, %v2899_v53  ;;  %v1423_v22 = vmul.f32 %v1903_v21, %v2814_v41  ;;  %1924 = vrcp.f32 %v1401_v38  ;;  %v1907_v34 = vpop.eup %1906  ;;  %vm1364_vm10 = vcmp.gt.f32.partialorder %v2630_v14, 20.0 }
 0x52e   : > { %v2952_v28 = vadd.f32 2.0, %v2902_v19  ;;  %v2955_v58 = vadd.f32 2.0, %v2907_v0  ;;  %v1425_v57 = vmul.f32 %v1905_v50, %v2817_v49  ;;  %1926 = vrcp.f32 %v1402_v10  ;;  %v1909_v13 = vpop.eup %1908 }
 0x52f   : > { %vm1365_vm11 = vcmp.gt.f32.partialorder %v2636_v26, 20.0  ;;  %v2967_v38 = vadd.f32 2.0, %v2914_v63  ;;  %v1427_v41 = vmul.f32 %v1907_v34, %v2820_v24  ;;  %1928 = vrcp.f32 %v1403_v9  ;;  %v1911_v0 = vpop.eup %1910 }
 0x530   : > { %v1486_v21 = vmul.f32 %v1423_v22, %v2598_v52  ;;  %vm1366_vm12 = vcmp.gt.f32.partialorder %v2642_v33, 20.0  ;;  %v2973_v49 = vadd.f32 2.0, %v2923_v15  ;;  %v1429_v10 = vmul.f32 %v1909_v13, %v2823_v8  ;;  %v1913_v19 = vpop.eup %1912 }
 0x531   : > { %1930 = vrcp.f32 %v1404_v16  ;;  %v1487_v50 = vmul.f32 %v1425_v57, %v2603_v39  ;;  %vm1367_vm13 = vcmp.gt.f32.partialorder %v2648_v35, 20.0  ;;  %v1431_v24 = vmul.f32 %v1911_v0, %v2826_v27  ;;  %v1915_v34 = vpop.eup %1914 }
 0x532   : > { %1932 = vrcp.f32 %v1405_v40  ;;  %v1488_v9 = vmul.f32 %v1427_v41, %v2608_v1  ;;  %v1518_v22 = vsel %vm1358_vm4, %v2598_v52, %v1486_v21  ;;  %vm1368_vm14 = vcmp.gt.f32.partialorder %v2654_v30, 20.0  ;;  %v1917_v13 = vpop.eup %1916 }
 0x533   : > { %v1433_v8 = vmul.f32 %v1913_v19, %v2830_v48  ;;  %1934 = vrcp.f32 %v1406_v45  ;;  %v1489_v57 = vmul.f32 %v1429_v10, %v2613_v46  ;;  %v1519_v27 = vsel %vm1359_vm5, %v2603_v39, %v1487_v50  ;;  %1550 = vst.msk [vmem:[%s2963_s8] sm:$0xff] %vm649_vm3, %v1518_v22  ;;  %v1919_v19 = vpop.eup %1918  ;;  %v3288_v39 = vld [vmem:[#allocation21_spill] sm:$0xff]  ;;  %v3292_v50 = vld [vmem:[#allocation23_spill] sm:$0xff] }
 0x534   : > { %vm1369_vm15 = vcmp.gt.f32.partialorder %v2660_v29, 20.0  ;;  %v1435_v52 = vmul.f32 %v1915_v34, %v2833_v32  ;;  %1936 = vrcp.f32 %v1407_v44  ;;  %v1490_v16 = vmul.f32 %v1431_v24, %v2618_v54  ;;  %1551 = vst.msk [vmem:[%s2963_s8 + $0x8] sm:$0xff] %vm649_vm3, %v1519_v27  ;;  %v3290_v44 = vld [vmem:[#allocation22_spill] sm:$0xff] }
 0x535   : > { %v1520_v48 = vsel %vm1360_vm6, %v2608_v1, %v1488_v9  ;;  %vm1370_vm0 = vcmp.gt.f32.partialorder %v2666_v42, 20.0  ;;  %v1437_v40 = vmul.f32 %v1917_v13, %v3288_v39  ;;  %1938 = vrcp.f32 %v2912_v36  ;;  %v1921_v0 = vpop.eup %1920  ;;  %v3289_v1 = vld [vmem:[#allocation2_spill] sm:$0xff] }
 0x536   : > { %v1491_v45 = vmul.f32 %v1433_v8, %v2624_v25  ;;  %v1521_v32 = vsel %vm1361_vm7, %v2613_v46, %v1489_v57  ;;  %1552 = vst.msk [vmem:[%s2963_s8 + $0x10] sm:$0xff] %vm649_vm3, %v1520_v48  ;;  %vm1371_vm1 = vcmp.gt.f32.partialorder %v3289_v1, 20.0  ;;  %v1439_v41 = vmul.f32 %v1919_v19, %v3290_v44  ;;  %v1923_v10 = vpop.eup %1922  ;;  %v3291_v46 = vld [vmem:[#allocation3_spill] sm:$0xff] }
 0x537   : > { %1940 = vrcp.f32 %v2918_v17  ;;  %v1492_v21 = vmul.f32 %v1435_v52, %v2630_v14  ;;  %v1522_v36 = vsel %vm1362_vm8, %v2618_v54, %v1490_v16  ;;  %1553 = vst.msk [vmem:[%s2963_s8 + $0x18] sm:$0xff] %vm649_vm3, %v1521_v32  ;;  %vm1372_vm2 = vcmp.gt.f32.partialorder %v3291_v46, 20.0  ;;  %v1925_v22 = vpop.eup %1924  ;;  %v3293_v54 = vld [vmem:[#allocation4_spill] sm:$0xff] }
 0x538   : > { %v1441_v24 = vmul.f32 %v1921_v0, %v3292_v50  ;;  %1942 = vrcp.f32 %v2921_v61  ;;  %v1493_v9 = vmul.f32 %v1437_v40, %v2636_v26  ;;  %v1523_v17 = vsel %vm1363_vm9, %v2624_v25, %v1491_v45  ;;  %1554 = vst.msk [vmem:[%s2963_s8 + $0x20] sm:$0xff] %vm649_vm3, %v1522_v36  ;;  %v1927_v57 = vpop.eup %1926  ;;  %v3294_v25 = vld [vmem:[#allocation5_spill] sm:$0xff] }
 0x539   : > { %vm1373_vm4 = vcmp.gt.f32.partialorder %v3293_v54, 20.0  ;;  %v1443_v34 = vmul.f32 %v1923_v10, %v2848_v20  ;;  %1944 = vrcp.f32 %v2927_v3  ;;  %v1494_v8 = vmul.f32 %v1439_v41, %v2642_v33  ;;  %1555 = vst.msk [vmem:[%s2963_s8 + $0x28] sm:$0xff] %vm649_vm3, %v1523_v17  ;;  %v1929_v13 = vpop.eup %1928  ;;  %v3296_v41 = vld [vmem:[#allocation7_spill] sm:$0xff]  ;;  %v3297_v10 = vld [vmem:[#allocation8_spill] sm:$0xff] }
 0x53a   : > { %v1524_v61 = vsel %vm1364_vm10, %v2630_v14, %v1492_v21  ;;  %vm1374_vm5 = vcmp.gt.f32.partialorder %v3294_v25, 20.0  ;;  %v1445_v27 = vmul.f32 %v1925_v22, %v2851_v60  ;;  %1946 = vrcp.f32 %v2930_v56  ;;  %v3295_v14 = vld [vmem:[#allocation6_spill] sm:$0xff] }
 0x53b   : > { %v1495_v20 = vmul.f32 %v1441_v24, %v2648_v35  ;;  %v1525_v3 = vsel %vm1365_vm11, %v2636_v26, %v1493_v9  ;;  %1556 = vst.msk [vmem:[%s2963_s8 + $0x30] sm:$0xff] %vm649_vm3, %v1524_v61  ;;  %vm1375_vm6 = vcmp.gt.f32.partialorder %v3295_v14, 20.0  ;;  %v1447_v52 = vmul.f32 %v1927_v57, %v2854_v31  ;;  %v1931_v16 = vpop.eup %1930  ;;  %v3298_v24 = vld [vmem:[#allocation9_spill] sm:$0xff] }
 0x53c   : > { %1948 = vrcp.f32 %v2934_v2  ;;  %v1496_v60 = vmul.f32 %v1443_v34, %v2654_v30  ;;  %v1526_v56 = vsel %vm1366_vm12, %v2642_v33, %v1494_v8  ;;  %1557 = vst.msk [vmem:[%s2963_s8 + $0x38] sm:$0xff] %vm649_vm3, %v1525_v3  ;;  %v1449_v26 = vmul.f32 %v1929_v13, %v2857_v11  ;;  %v1933_v2 = vpop.eup %1932 }
 0x53d   : > { %1950 = vrcp.f32 %v2937_v12  ;;  %v1497_v48 = vmul.f32 %v1445_v27, %v2660_v29  ;;  %v1527_v31 = vsel %vm1367_vm13, %v2648_v35, %v1495_v20  ;;  %1558 = vst.msk [vmem:[%s2963_s8 + $0x40] sm:$0xff] %vm649_vm3, %v1526_v56  ;;  %v1451_v19 = vmul.f32 %v1931_v16, %v2859_v18  ;;  %v1935_v12 = vpop.eup %1934  ;;  %v3304_v16 = vld [vmem:[#allocation26_spill] sm:$0xff] }
 0x53e   : > { %1952 = vrcp.f32 %v2940_v51  ;;  %v1498_v33 = vmul.f32 %v1447_v52, %v2666_v42  ;;  %v1528_v11 = vsel %vm1368_vm14, %v2654_v30, %v1496_v60  ;;  %1559 = vst.msk [vmem:[%s2963_s8 + $0x48] sm:$0xff] %vm649_vm3, %v1527_v31  ;;  %v1453_v39 = vmul.f32 %v1933_v2, %v2861_v59  ;;  %v1937_v51 = vpop.eup %1936 }
 0x53f   : > { %1954 = vrcp.f32 %v2944_v7  ;;  %v1499_v35 = vmul.f32 %v1449_v26, %v3289_v1  ;;  %v1529_v18 = vsel %vm1369_vm15, %v2660_v29, %v1497_v48  ;;  %1560 = vst.msk [vmem:[%s2963_s8 + $0x50] sm:$0xff] %vm649_vm3, %v1528_v11  ;;  %v1455_v40 = vmul.f32 %v1935_v12, %v2863_v5  ;;  %v1939_v7 = vpop.eup %1938  ;;  %v3305_v48 = vld [vmem:[#allocation13_spill] sm:$0xff]  ;;  %v3306_v11 = vld [vmem:[#allocation14_spill] sm:$0xff] }
 0x540   : > { %1956 = vrcp.f32 %v2947_v62  ;;  %v1500_v30 = vmul.f32 %v1451_v19, %v3291_v46  ;;  %v1530_v59 = vsel %vm1370_vm0, %v2666_v42, %v1498_v33  ;;  %1561 = vst.msk [vmem:[%s2963_s8 + $0x58] sm:$0xff] %vm649_vm3, %v1529_v18  ;;  %v1457_v45 = vmul.f32 %v1937_v51, %v2865_v6  ;;  %v3307_v18 = vld [vmem:[#allocation27_spill] sm:$0xff] }
 0x541   : > { %1958 = vrcp.f32 %v2952_v28  ;;  %v1501_v29 = vmul.f32 %v1453_v39, %v3293_v54  ;;  %v1531_v5 = vsel %vm1371_vm1, %v3289_v1, %v1499_v35  ;;  %1562 = vst.msk [vmem:[%s2963_s8 + $0x60] sm:$0xff] %vm649_vm3, %v1530_v59  ;;  %v1941_v62 = vpop.eup %1940  ;;  %v1459_v32 = vmul.f32 %v1939_v7, %v2867_v4 }
 0x542   : > { %1960 = vrcp.f32 %v2955_v58  ;;  %v1502_v42 = vmul.f32 %v1455_v40, %v3294_v25  ;;  %v1532_v6 = vsel %vm1372_vm2, %v3291_v46, %v1500_v30  ;;  %1563 = vst.msk [vmem:[%s2963_s8 + $0x68] sm:$0xff] %vm649_vm3, %v1531_v5  ;;  %v1943_v28 = vpop.eup %1942  ;;  %v1461_v0 = vmul.f32 %v1941_v62, %v2870_v47  ;;  %v3308_v40 = vld [vmem:[#allocation15_spill] sm:$0xff] }
 0x543   : > { %1962 = vrcp.f32 %v2967_v38  ;;  %v1503_v1 = vmul.f32 %v1457_v45, %v3295_v14  ;;  %v1533_v4 = vsel %vm1373_vm4, %v3293_v54, %v1501_v29  ;;  %1564 = vst.msk [vmem:[%s2963_s8 + $0x70] sm:$0xff] %vm649_vm3, %v1532_v6  ;;  %v1945_v58 = vpop.eup %1944  ;;  %v1463_v44 = vmul.f32 %v1943_v28, %v2872_v23  ;;  %v3299_v54 = vld [vmem:[#allocation10_spill] sm:$0xff]  ;;  %v3310_v29 = vld [vmem:[#allocation16_spill] sm:$0xff]  ;;  %v3311_v6 = vld [vmem:[#allocation17_spill] sm:$0xff] }
 0x544   : > { %1964 = vrcp.f32 %v2973_v49  ;;  %v1504_v21 = vmul.f32 %v1459_v32, %v3296_v41  ;;  %v1534_v47 = vsel %vm1374_vm5, %v3294_v25, %v1502_v42  ;;  %1565 = vst.msk [vmem:[%s2963_s8 + $0x78] sm:$0xff] %vm649_vm3, %v1533_v4  ;;  %v1947_v38 = vpop.eup %1946  ;;  %vm1376_vm7 = vcmp.gt.f32.partialorder %v3296_v41, 20.0  ;;  %v3301_v25 = vld [vmem:[#allocation11_spill] sm:$0xff]  ;;  %v3312_v4 = vld [vmem:[#allocation18_spill] sm:$0xff] }
 0x545   : > { %v1465_v36 = vmul.f32 %v1945_v58, %v2874_v37  ;;  %v1505_v46 = vmul.f32 %v1461_v0, %v3297_v10  ;;  %v1535_v23 = vsel %vm1375_vm6, %v3295_v14, %v1503_v1  ;;  %1566 = vst.msk [vmem:[%s2963_s8 + $0x80] sm:$0xff] %vm649_vm3, %v1534_v47  ;;  %vm1377_vm8 = vcmp.gt.f32.partialorder %v3297_v10, 20.0  ;;  %v3303_v14 = vld [vmem:[#allocation12_spill] sm:$0xff] }
 0x546   : > { %v1949_v49 = vpop.eup %1948  ;;  %v1467_v50 = vmul.f32 %v1947_v38, %v2877_v43  ;;  %v1506_v9 = vmul.f32 %v1463_v44, %v3298_v24  ;;  %v1536_v17 = vsel %vm1376_vm7, %v3296_v41, %v1504_v21  ;;  %1567 = vst.msk [vmem:[%s2963_s8 + $0x88] sm:$0xff] %vm649_vm3, %v1535_v23  ;;  %vm1378_vm9 = vcmp.gt.f32.partialorder %v3298_v24, 20.0  ;;  %v3300_v43 = vld [vmem:[#allocation24_spill] sm:$0xff] }
 0x547   : > { %v1951_v37 = vpop.eup %1950  ;;  %v1469_v22 = vmul.f32 %v1949_v49, %v2881_v55  ;;  %v1507_v34 = vmul.f32 %v1465_v36, %v3299_v54  ;;  %v1537_v8 = vsel %vm1377_vm8, %v3297_v10, %v1505_v46  ;;  %1568 = vst.msk [vmem:[%s2963_s8 + $0x90] sm:$0xff] %vm649_vm3, %v1536_v17  ;;  %vm1379_vm10 = vcmp.gt.f32.partialorder %v3299_v54, 20.0  ;;  %v3302_v55 = vld [vmem:[#allocation25_spill] sm:$0xff]  ;;  %v3314_v47 = vld [vmem:[#allocation20_spill] sm:$0xff] }
 0x548   : > { %v1953_v61 = vpop.eup %1952  ;;  %v1471_v57 = vmul.f32 %v1951_v37, %v3300_v43  ;;  %v1508_v27 = vmul.f32 %v1467_v50, %v3301_v25  ;;  %v1538_v20 = vsel %vm1378_vm9, %v3298_v24, %v1506_v9  ;;  %1569 = vst.msk [vmem:[%s2963_s8 + $0x98] sm:$0xff] %vm649_vm3, %v1537_v8  ;;  %vm1380_vm11 = vcmp.gt.f32.partialorder %v3301_v25, 20.0 }
 0x549   : > { %v1955_v3 = vpop.eup %1954  ;;  %v1473_v13 = vmul.f32 %v1953_v61, %v3302_v55  ;;  %v1509_v52 = vmul.f32 %v1469_v22, %v3303_v14  ;;  %v1539_v60 = vsel %vm1379_vm10, %v3299_v54, %v1507_v34  ;;  %1570 = vst.msk [vmem:[%s2963_s8 + $0xa0] sm:$0xff] %vm649_vm3, %v1538_v20  ;;  %vm1381_vm12 = vcmp.gt.f32.partialorder %v3303_v14, 20.0 }
 0x54a   : > { %v1957_v56 = vpop.eup %1956  ;;  %v1475_v26 = vmul.f32 %v1955_v3, %v3304_v16  ;;  %v1510_v31 = vmul.f32 %v1471_v57, %v3305_v48  ;;  %v1540_v2 = vsel %vm1380_vm11, %v3301_v25, %v1508_v27  ;;  %1571 = vst.msk [vmem:[%s2963_s8 + $0xa8] sm:$0xff] %vm649_vm3, %v1539_v60  ;;  %vm1382_vm13 = vcmp.gt.f32.partialorder %v3305_v48, 20.0 }
 0x54b   : > { %v1959_v19 = vpop.eup %1958  ;;  %v1477_v33 = vmul.f32 %v1957_v56, %v2899_v53  ;;  %v1511_v12 = vmul.f32 %v1473_v13, %v3306_v11  ;;  %v1541_v39 = vsel %vm1381_vm12, %v3303_v14, %v1509_v52  ;;  %1572 = vst.msk [vmem:[%s2963_s8 + $0xb0] sm:$0xff] %vm649_vm3, %v1540_v2  ;;  %vm1383_vm14 = vcmp.gt.f32.partialorder %v3306_v11, 20.0  ;;  %v3309_v53 = vld [vmem:[#allocation28_spill] sm:$0xff] }
 0x54c   : > { %v1961_v35 = vpop.eup %1960  ;;  %v1479_v51 = vmul.f32 %v1959_v19, %v3307_v18  ;;  %v1512_v30 = vmul.f32 %v1475_v26, %v3308_v40  ;;  %v1542_v59 = vsel %vm1382_vm13, %v3305_v48, %v1510_v31  ;;  %1573 = vst.msk [vmem:[%s2963_s8 + $0xb8] sm:$0xff] %vm649_vm3, %v1541_v39  ;;  %vm1384_vm15 = vcmp.gt.f32.partialorder %v3308_v40, 20.0 }
 0x54d   : > { %v1963_v7 = vpop.eup %1962  ;;  %v1481_v45 = vmul.f32 %v1961_v35, %v3309_v53  ;;  %v1513_v5 = vmul.f32 %v1477_v33, %v3310_v29  ;;  %v1543_v62 = vsel %vm1383_vm14, %v3306_v11, %v1511_v12  ;;  %1574 = vst.msk [vmem:[%s2963_s8 + $0xc0] sm:$0xff] %vm649_vm3, %v1542_v59  ;;  %vm1385_vm0 = vcmp.gt.f32.partialorder %v3310_v29, 20.0 }
 0x54e   : > { %v1965_v32 = vpop.eup %1964  ;;  %v1483_v42 = vmul.f32 %v1963_v7, %v2914_v63  ;;  %v1514_v28 = vmul.f32 %v1479_v51, %v3311_v6  ;;  %v1544_v0 = vsel %vm1384_vm15, %v3308_v40, %v1512_v30  ;;  %1575 = vst.msk [vmem:[%s2963_s8 + $0xc8] sm:$0xff] %vm649_vm3, %v1543_v62  ;;  %vm1386_vm1 = vcmp.gt.f32.partialorder %v3311_v6, 20.0  ;;  %v3313_v63 = vld [vmem:[#allocation19_spill] sm:$0xff] }
 0x54f   : > { %v1485_v1 = vmul.f32 %v1965_v32, %v2923_v15  ;;  %v1515_v58 = vmul.f32 %v1481_v45, %v3312_v4  ;;  %v1545_v44 = vsel %vm1385_vm0, %v3310_v29, %v1513_v5  ;;  %1576 = vst.msk [vmem:[%s2963_s8 + $0xd0] sm:$0xff] %vm649_vm3, %v1544_v0  ;;  %vm1387_vm2 = vcmp.gt.f32.partialorder %v3312_v4, 20.0 }
 0x550   : > { %v1516_v41 = vmul.f32 %v1483_v42, %v3313_v63  ;;  %v1546_v21 = vsel %vm1386_vm1, %v3311_v6, %v1514_v28  ;;  %1577 = vst.msk [vmem:[%s2963_s8 + $0xd8] sm:$0xff] %vm649_vm3, %v1545_v44  ;;  %vm1388_vm4 = vcmp.gt.f32.partialorder %v3313_v63, 20.0  ;;  %vm1389_vm5 = vcmp.gt.f32.partialorder %v3314_v47, 20.0 }
 0x551   : > { %v1517_v15 = vmul.f32 %v1485_v1, %v3314_v47  ;;  %v1547_v38 = vsel %vm1387_vm2, %v3312_v4, %v1515_v58  ;;  %1578 = vst.msk [vmem:[%s2963_s8 + $0xe0] sm:$0xff] %vm649_vm3, %v1546_v21 }
 0x552   : > { %v1548_v36 = vsel %vm1388_vm4, %v3313_v63, %v1516_v41  ;;  %1579 = vst.msk [vmem:[%s2963_s8 + $0xe8] sm:$0xff] %vm649_vm3, %v1547_v38 }
 0x553   : > { %v1549_v10 = vsel %vm1389_vm5, %v3314_v47, %v1517_v15  ;;  %1580 = vst.msk [vmem:[%s2963_s8 + $0xf0] sm:$0xff] %vm649_vm3, %v1548_v36 }
 0x554   : > { %1581 = vst.msk [vmem:[%s2963_s8 + $0xf8] sm:$0xff] %vm649_vm3, %v1549_v10 }
 0x555 PF: > { %s17_s24 = sadd.s32 1, %s1972_s24  }
 0x556   : > { %p14_p4 = scmp.ge.s32.totalorder %s17_s24, 4  }
 0x558   :  { %16 = sbr.rel (!%p14_p4) target bundleno = 1 (0x1), region = 78 }

</bundles_post_ra>
